<compile_context>
chip_gen: v7x
topology: tpu7x:2x2x1
jax: 0.10.0
libtpu: 0.0.40
codegen_flags: <defaults>
</compile_context>

<pallas_src>
import functools

import jax
import jax.numpy as jnp
from jax.experimental import pallas as pl
from jax.experimental.pallas import tpu as pltpu


def _round_up(x, m):
    return (x + m - 1) // m * m


def _vq_kernel(ze_ref, wt_ref, w_ref, wsq_ref, kidx_ref, seg_ref, sub_ref,
               zq_ref, idx_ref, sse_ref, *, pack, k, n_rows, tile_rows):
    """One tile of packed token rows against the full resident (block-diagonal) codebook.

    ze_ref  : (tile_rows, pack*D)  `pack` tokens side by side on the 128-lane axis
    wt_ref  : (pack*D, pack*K)     block_diag(W^T) repeated `pack` times
    w_ref   : (pack*K, pack*D)     block_diag(W)
    wsq_ref : (1, pack*K)          ||W_k||^2 tiled `pack` times
    kidx_ref: (pack*K, pack)       column p holds k on segment p (index extraction)
    seg_ref, sub_ref: (1, pack*K)  lane -> packed-token segment id / codebook index
    """
    i = pl.program_id(0)

    ze = ze_ref[...]                       # (tp, P*D) f32, lane-dense
    wt = wt_ref[...]                       # (P*D, P*K) resident
    w = w_ref[...]                         # (P*K, P*D) resident
    wsq = wsq_ref[...]                     # (1, P*K)
    seg = seg_ref[...]                     # (1, P*K) int32
    sub = sub_ref[...]                     # (1, P*K) int32

    # score_nk = ||W_k||^2 - 2 ze_n . W_k  (per-token ||ze||^2 dropped: argmin invariant,
    # saves one cross-lane D-reduction per token).  HIGHEST keeps f32 accuracy so near-tie
    # argmins match the exact pairwise-distance reference; the MXU has plenty of slack.
    cross = jnp.dot(ze, wt, precision=jax.lax.Precision.HIGHEST,
                    preferred_element_type=jnp.float32)            # (tp, P*K)
    score = wsq - 2.0 * cross

    # Segmented (per-token) min over each K-lane segment, broadcast back across the segment.
    minb = score
    for p in range(pack):
        in_seg = seg == p
        m_p = jnp.min(jnp.where(in_seg, score, jnp.inf), axis=-1, keepdims=True)
        minb = jnp.where(in_seg, m_p, minb)

    # First minimizing index within each segment (torch.min tie-break).
    cand = jnp.where(score <= minb, sub, k)                        # (tp, P*K) int32
    idxb = cand
    for p in range(pack):
        in_seg = seg == p
        i_p = jnp.min(jnp.where(in_seg, cand, k), axis=-1, keepdims=True)
        idxb = jnp.where(in_seg, i_p, idxb)

    onehot = (sub == idxb).astype(jnp.float32)                     # one 1 per segment

    # Codebook lookup stays packed: onehot @ block_diag(W) -> (tp, P*D) lane-dense.
    # HIGHEST makes the lookup bit-exact (0/1 weights reconstruct the f32 rows exactly).
    zq = jnp.dot(onehot, w, precision=jax.lax.Precision.HIGHEST,
                 preferred_element_type=jnp.float32)
    # Integer indices via a tiny matmul (exact for one-hot x small integers at any precision).
    idx_f = jnp.dot(onehot, kidx_ref[...], precision=jax.lax.Precision.DEFAULT,
                    preferred_element_type=jnp.float32)            # (tp, pack)

    zq_ref[...] = zq                        # forward value of ze + (zq - ze).detach()
    idx_ref[...] = idx_f.astype(jnp.int32)

    # Per-tile partial SSE as lane-dense column sums; ragged (clipped) rows masked out.
    diff = zq - ze
    sq = diff * diff
    if n_rows % tile_rows != 0:
        rows = i * tile_rows + jax.lax.broadcasted_iota(jnp.int32, sq.shape, 0)
        sq = jnp.where(rows < n_rows, sq, 0.0)
    sse_ref[...] = jnp.sum(sq, axis=0, keepdims=True)              # (1, P*D)


@functools.partial(jax.jit, static_argnames=("tile_n",))
def quantized_embedding_forward(ze, embed_w, *, tile_n=8192):
    """ze: (B, L, D) float; embed_w: (K, D) float.

    Returns (zq, mse, zq_idx) mirroring QuantizedEmbedding.forward (eval mode):
      zq:     (B, L, D) float32
      mse:    scalar float32
      zq_idx: (B, L)    int32
    """
    b, l, d = ze.shape
    k = embed_w.shape[0]
    n = b * l

    ze = ze.astype(jnp.float32)
    embed_w = embed_w.astype(jnp.float32)

    # Lane packing: put `pack` tokens side by side on the 128-lane axis (free reshape of the
    # contiguous (N, D) slab).  Falls back to pack=1 (still correct) if N isn't divisible.
    pack = 1
    if d % 128 != 0:
        for cand in (2, 4, 8):
            if n % cand == 0 and (cand * d) % 128 == 0:
                pack = cand
                break

    n_rows = n // pack
    pd = pack * d
    pk = pack * k

    ze_rows = ze.reshape(n_rows, pd)

    # Codebook-invariant work hoisted out of the kernel (all small, VMEM-resident).
    eye_p = jnp.eye(pack, dtype=jnp.float32)
    w_t_blk = jnp.kron(eye_p, embed_w.T)                                    # (P*D, P*K)
    w_blk = jnp.kron(eye_p, embed_w)                                        # (P*K, P*D)
    w_sq = jnp.tile(jnp.sum(embed_w * embed_w, axis=-1), pack)[None, :]     # (1, P*K)
    kidx = jnp.kron(eye_p, jnp.arange(k, dtype=jnp.float32)[:, None])       # (P*K, P)
    lane = jnp.arange(pk, dtype=jnp.int32)
    seg_row = (lane // k)[None, :]                                          # (1, P*K)
    sub_row = (lane % k)[None, :]                                           # (1, P*K)

    # Tile sizing: big tiles amortize the ~0.35us per-grid-step overhead; tiles are balanced
    # so the ragged tail isn't mostly padding, and we keep >= 2 tiles when there is enough
    # work so the "parallel" axis feeds both TensorCores.  No wrapper-side padding: Pallas
    # clips the ragged last block and the kernel masks those rows out of the SSE.
    tile_rows = max(8, _round_up(max(1, tile_n // pack), 8))
    tile_rows = min(tile_rows, _round_up(n_rows, 8))
    num_tiles = pl.cdiv(n_rows, tile_rows)
    if num_tiles == 1 and n >= 2048:
        num_tiles = 2
    if num_tiles > 1:
        tile_rows = max(8, _round_up(pl.cdiv(n_rows, num_tiles), 8))
        num_tiles = pl.cdiv(n_rows, tile_rows)

    kernel = functools.partial(_vq_kernel, pack=pack, k=k,
                               n_rows=n_rows, tile_rows=tile_rows)

    zq_rows, idx_rows, sse_tiles = pl.pallas_call(
        kernel,
        out_shape=(
            jax.ShapeDtypeStruct((n_rows, pd), jnp.float32),
            jax.ShapeDtypeStruct((n_rows, pack), jnp.int32),
            jax.ShapeDtypeStruct((num_tiles, pd), jnp.float32),
        ),
        grid_spec=pltpu.PrefetchScalarGridSpec(
            num_scalar_prefetch=0,
            grid=(num_tiles,),
            in_specs=[
                pl.BlockSpec((tile_rows, pd), lambda i: (i, 0)),    # packed ze tile
                pl.BlockSpec((pd, pk), lambda i: (0, 0)),           # block_diag(W^T), resident
                pl.BlockSpec((pk, pd), lambda i: (0, 0)),           # block_diag(W), resident
                pl.BlockSpec((1, pk), lambda i: (0, 0)),            # ||W||^2 row, resident
                pl.BlockSpec((pk, pack), lambda i: (0, 0)),         # index-extraction matrix
                pl.BlockSpec((1, pk), lambda i: (0, 0)),            # lane -> segment id
                pl.BlockSpec((1, pk), lambda i: (0, 0)),            # lane -> codebook index
            ],
            out_specs=[
                pl.BlockSpec((tile_rows, pd), lambda i: (i, 0)),    # packed zq tile (lane-dense)
                pl.BlockSpec((tile_rows, pack), lambda i: (i, 0)),  # per-token indices
                pl.BlockSpec((1, pd), lambda i: (i, 0)),            # lane-dense SSE partials
            ],
        ),
        compiler_params=pltpu.CompilerParams(
            dimension_semantics=("parallel",),      # independent tiles -> both TCs (v7x)
            vmem_limit_bytes=48 * 1024 * 1024,      # > v5e 16MiB scoped default, < v7x 64MiB phys
        ),
    )(ze_rows, w_t_blk, w_blk, w_sq, kidx, seg_row, sub_row)

    zq = zq_rows.reshape(b, l, d)
    zq_idx = idx_rows.reshape(b, l)
    mse = jnp.sum(sse_tiles) / jnp.float32(n * d)
    return zq, mse, zq_idx


def _reference_forward(ze, embed_w):
    """Pure-JAX reference matching the PyTorch forward (eval mode)."""
    b = ze.shape[0]
    d = ze.shape[-1]
    ze_flat = ze.reshape(-1, d)
    dist = jnp.sum((ze_flat[:, None, :] - embed_w[None, :, :]) ** 2, axis=-1)
    zq_idx = jnp.argmin(dist, axis=-1)
    zq = embed_w[zq_idx]
    zq = zq.reshape(b, -1, d)
    zq_idx = zq_idx.reshape(b, -1)
    mse = jnp.mean((zq - ze) ** 2)
    zq_out = ze + (zq - ze)
    return zq_out, mse, zq_idx


def _check(ze, embed_w, tile_n):
    zq, mse, zq_idx = quantized_embedding_forward(ze, embed_w, tile_n=tile_n)
    jax.block_until_ready((zq, mse, zq_idx))
    zq_ref, mse_ref, idx_ref = _reference_forward(ze, embed_w)
    assert zq.shape == ze.shape and zq_idx.shape == ze.shape[:2]
    assert jnp.all(zq_idx == idx_ref.astype(jnp.int32))
    assert jnp.allclose(zq, zq_ref, atol=1e-5, rtol=1e-5)
    assert jnp.allclose(mse, mse_ref, atol=1e-5, rtol=1e-5)


if __name__ == "__main__":
    key = jax.random.PRNGKey(0)
    k_w, k_z1, k_z2 = jax.random.split(key, 3)

    num_embeddings = 64   # K
    embed_dim = 32        # D

    # Deterministic "parameters" (stand-in for torch.randn codebook).
    embed_w = jax.random.normal(k_w, (num_embeddings, embed_dim), dtype=jnp.float32)

    # Small shape consistent with the module's forward: ze (B, L, D).
    B, L = 2, 16
    ze_small = jax.random.normal(k_z1, (B, L, embed_dim), dtype=jnp.float32)
    _check(ze_small, embed_w, tile_n=8192)

    # Larger shape: 2 balanced tiles (feeds both TensorCores), ragged last block, no pad copy.
    B2, L2 = 3, 700                      # N = 2100 tokens -> 525 packed rows -> 2 x 264-row tiles
    ze_large = jax.random.normal(k_z2, (B2, L2, embed_dim), dtype=jnp.float32)
    _check(ze_large, embed_w, tile_n=8192)

    # Small-tile config: exercises several grid steps and the ragged / masked-SSE path.
    _check(ze_large, embed_w, tile_n=512)

    print("KERNEL_OK")
</pallas_src>

<mosaic_0001>
module attributes {stable_mosaic.version = 11 : i64} {
  func.func @_vq_kernel(%arg0: i32, %arg1: memref<8x128xf32, #tpu.memory_space<vmem>>, %arg2: memref<128x256xf32, #tpu.memory_space<vmem>>, %arg3: memref<256x128xf32, #tpu.memory_space<vmem>>, %arg4: memref<1x256xf32, #tpu.memory_space<vmem>>, %arg5: memref<256x4xf32, #tpu.memory_space<vmem>>, %arg6: memref<1x256xi32, #tpu.memory_space<vmem>>, %arg7: memref<1x256xi32, #tpu.memory_space<vmem>>, %arg8: memref<8x128xf32, #tpu.memory_space<vmem>>, %arg9: memref<8x4xi32, #tpu.memory_space<vmem>>, %arg10: memref<1x128xf32, #tpu.memory_space<vmem>>) attributes {dimension_semantics = [#tpu.dimension_semantics<parallel>], iteration_bounds = array<i64: 1>, scalar_prefetch = 0 : i64, scratch_operands = 0 : i64, tpu.core_type = #tpu.core_type<tc>, window_params = [{transform_indices = @transform_0, window_bounds = array<i64: 8, 128>}, {pipeline_mode = #tpu.pipeline_mode<synchronous>, transform_indices = @transform_1, window_bounds = array<i64: 128, 256>}, {pipeline_mode = #tpu.pipeline_mode<synchronous>, transform_indices = @transform_2, window_bounds = array<i64: 256, 128>}, {pipeline_mode = #tpu.pipeline_mode<synchronous>, transform_indices = @transform_3, window_bounds = array<i64: 1, 256>}, {pipeline_mode = #tpu.pipeline_mode<synchronous>, transform_indices = @transform_4, window_bounds = array<i64: 256, 4>}, {pipeline_mode = #tpu.pipeline_mode<synchronous>, transform_indices = @transform_5, window_bounds = array<i64: 1, 256>}, {pipeline_mode = #tpu.pipeline_mode<synchronous>, transform_indices = @transform_6, window_bounds = array<i64: 1, 256>}, {transform_indices = @transform_7, window_bounds = array<i64: 8, 128>}, {transform_indices = @transform_8, window_bounds = array<i64: 8, 4>}, {transform_indices = @transform_9, window_bounds = array<i64: 1, 128>}]} {
    %c0 = arith.constant 0 : index
    %c0_0 = arith.constant 0 : index
    %0 = vector.load %arg1[%c0, %c0_0] : memref<8x128xf32, #tpu.memory_space<vmem>>, vector<8x128xf32>
    %c0_1 = arith.constant 0 : index
    %c0_2 = arith.constant 0 : index
    %1 = vector.load %arg2[%c0_1, %c0_2] : memref<128x256xf32, #tpu.memory_space<vmem>>, vector<128x256xf32>
    %c0_3 = arith.constant 0 : index
    %c0_4 = arith.constant 0 : index
    %2 = vector.load %arg3[%c0_3, %c0_4] : memref<256x128xf32, #tpu.memory_space<vmem>>, vector<256x128xf32>
    %c0_5 = arith.constant 0 : index
    %c0_6 = arith.constant 0 : index
    %3 = vector.load %arg4[%c0_5, %c0_6] : memref<1x256xf32, #tpu.memory_space<vmem>>, vector<1x256xf32>
    %c0_7 = arith.constant 0 : index
    %c0_8 = arith.constant 0 : index
    %4 = vector.load %arg6[%c0_7, %c0_8] : memref<1x256xi32, #tpu.memory_space<vmem>>, vector<1x256xi32>
    %c0_9 = arith.constant 0 : index
    %c0_10 = arith.constant 0 : index
    %5 = vector.load %arg7[%c0_9, %c0_10] : memref<1x256xi32, #tpu.memory_space<vmem>>, vector<1x256xi32>
    %cst = arith.constant dense<0.000000e+00> : vector<8x256xf32>
    %6 = tpu.matmul %0, %1, %cst {dimension_numbers = #tpu.dot_dimension_numbers<[1], [0], [0], [1], [0, 0, 1, 1], [], []>, precision = #tpu.contract_precision<fp32>} : vector<8x128xf32>, vector<128x256xf32>, vector<8x256xf32> -> vector<8x256xf32>
    %cst_11 = arith.constant 2.000000e+00 : f32
    %7 = vector.broadcast %cst_11 : f32 to vector<8x256xf32>
    %8 = arith.mulf %7, %6 : vector<8x256xf32>
    %9 = vector.broadcast %3 : vector<1x256xf32> to vector<8x256xf32>
    %10 = arith.subf %9, %8 : vector<8x256xf32>
    %c0_i32 = arith.constant 0 : i32
    %11 = vector.broadcast %c0_i32 : i32 to vector<1x256xi32>
    %12 = arith.cmpi eq, %4, %11 : vector<1x256xi32>
    %cst_12 = arith.constant 0x7F800000 : f32
    %13 = vector.shape_cast %12 : vector<1x256xi1> to vector<1x256xi1>
    %14 = vector.broadcast %13 : vector<1x256xi1> to vector<8x256xi1>
    %15 = vector.broadcast %cst_12 : f32 to vector<8x256xf32>
    %16 = arith.select %14, %10, %15 : vector<8x256xi1>, vector<8x256xf32>
    %cst_13 = arith.constant dense<0x7F800000> : vector<8xf32>
    %17 = vector.multi_reduction <minimumf>, %16, %cst_13 [1] : vector<8x256xf32> to vector<8xf32>
    %18 = vector.shape_cast %17 : vector<8xf32> to vector<8x1xf32>
    %19 = vector.shape_cast %12 : vector<1x256xi1> to vector<1x256xi1>
    %20 = vector.broadcast %19 : vector<1x256xi1> to vector<8x256xi1>
    %21 = vector.shape_cast %18 : vector<8x1xf32> to vector<8x1xf32>
    %22 = vector.broadcast %21 : vector<8x1xf32> to vector<8x256xf32>
    %23 = arith.select %20, %22, %10 : vector<8x256xi1>, vector<8x256xf32>
    %c1_i32 = arith.constant 1 : i32
    %24 = vector.broadcast %c1_i32 : i32 to vector<1x256xi32>
    %25 = arith.cmpi eq, %4, %24 : vector<1x256xi32>
    %cst_14 = arith.constant 0x7F800000 : f32
    %26 = vector.shape_cast %25 : vector<1x256xi1> to vector<1x256xi1>
    %27 = vector.broadcast %26 : vector<1x256xi1> to vector<8x256xi1>
    %28 = vector.broadcast %cst_14 : f32 to vector<8x256xf32>
    %29 = arith.select %27, %10, %28 : vector<8x256xi1>, vector<8x256xf32>
    %cst_15 = arith.constant dense<0x7F800000> : vector<8xf32>
    %30 = vector.multi_reduction <minimumf>, %29, %cst_15 [1] : vector<8x256xf32> to vector<8xf32>
    %31 = vector.shape_cast %30 : vector<8xf32> to vector<8x1xf32>
    %32 = vector.shape_cast %25 : vector<1x256xi1> to vector<1x256xi1>
    %33 = vector.broadcast %32 : vector<1x256xi1> to vector<8x256xi1>
    %34 = vector.shape_cast %31 : vector<8x1xf32> to vector<8x1xf32>
    %35 = vector.broadcast %34 : vector<8x1xf32> to vector<8x256xf32>
    %36 = arith.select %33, %35, %23 : vector<8x256xi1>, vector<8x256xf32>
    %c2_i32 = arith.constant 2 : i32
    %37 = vector.broadcast %c2_i32 : i32 to vector<1x256xi32>
    %38 = arith.cmpi eq, %4, %37 : vector<1x256xi32>
    %cst_16 = arith.constant 0x7F800000 : f32
    %39 = vector.shape_cast %38 : vector<1x256xi1> to vector<1x256xi1>
    %40 = vector.broadcast %39 : vector<1x256xi1> to vector<8x256xi1>
    %41 = vector.broadcast %cst_16 : f32 to vector<8x256xf32>
    %42 = arith.select %40, %10, %41 : vector<8x256xi1>, vector<8x256xf32>
    %cst_17 = arith.constant dense<0x7F800000> : vector<8xf32>
    %43 = vector.multi_reduction <minimumf>, %42, %cst_17 [1] : vector<8x256xf32> to vector<8xf32>
    %44 = vector.shape_cast %43 : vector<8xf32> to vector<8x1xf32>
    %45 = vector.shape_cast %38 : vector<1x256xi1> to vector<1x256xi1>
    %46 = vector.broadcast %45 : vector<1x256xi1> to vector<8x256xi1>
    %47 = vector.shape_cast %44 : vector<8x1xf32> to vector<8x1xf32>
    %48 = vector.broadcast %47 : vector<8x1xf32> to vector<8x256xf32>
    %49 = arith.select %46, %48, %36 : vector<8x256xi1>, vector<8x256xf32>
    %c3_i32 = arith.constant 3 : i32
    %50 = vector.broadcast %c3_i32 : i32 to vector<1x256xi32>
    %51 = arith.cmpi eq, %4, %50 : vector<1x256xi32>
    %cst_18 = arith.constant 0x7F800000 : f32
    %52 = vector.shape_cast %51 : vector<1x256xi1> to vector<1x256xi1>
    %53 = vector.broadcast %52 : vector<1x256xi1> to vector<8x256xi1>
    %54 = vector.broadcast %cst_18 : f32 to vector<8x256xf32>
    %55 = arith.select %53, %10, %54 : vector<8x256xi1>, vector<8x256xf32>
    %cst_19 = arith.constant dense<0x7F800000> : vector<8xf32>
    %56 = vector.multi_reduction <minimumf>, %55, %cst_19 [1] : vector<8x256xf32> to vector<8xf32>
    %57 = vector.shape_cast %56 : vector<8xf32> to vector<8x1xf32>
    %58 = vector.shape_cast %51 : vector<1x256xi1> to vector<1x256xi1>
    %59 = vector.broadcast %58 : vector<1x256xi1> to vector<8x256xi1>
    %60 = vector.shape_cast %57 : vector<8x1xf32> to vector<8x1xf32>
    %61 = vector.broadcast %60 : vector<8x1xf32> to vector<8x256xf32>
    %62 = arith.select %59, %61, %49 : vector<8x256xi1>, vector<8x256xf32>
    %63 = arith.cmpf ole, %10, %62 : vector<8x256xf32>
    %c64_i32 = arith.constant 64 : i32
    %64 = vector.shape_cast %5 : vector<1x256xi32> to vector<1x256xi32>
    %65 = vector.broadcast %64 : vector<1x256xi32> to vector<8x256xi32>
    %66 = vector.broadcast %c64_i32 : i32 to vector<8x256xi32>
    %67 = arith.select %63, %65, %66 : vector<8x256xi1>, vector<8x256xi32>
    %c0_i32_20 = arith.constant 0 : i32
    %68 = vector.broadcast %c0_i32_20 : i32 to vector<1x256xi32>
    %69 = arith.cmpi eq, %4, %68 : vector<1x256xi32>
    %c64_i32_21 = arith.constant 64 : i32
    %70 = vector.shape_cast %69 : vector<1x256xi1> to vector<1x256xi1>
    %71 = vector.broadcast %70 : vector<1x256xi1> to vector<8x256xi1>
    %72 = vector.broadcast %c64_i32_21 : i32 to vector<8x256xi32>
    %73 = arith.select %71, %67, %72 : vector<8x256xi1>, vector<8x256xi32>
    %cst_22 = arith.constant dense<2147483647> : vector<8xi32>
    %74 = vector.multi_reduction <minsi>, %73, %cst_22 [1] : vector<8x256xi32> to vector<8xi32>
    %75 = vector.shape_cast %74 : vector<8xi32> to vector<8x1xi32>
    %76 = vector.shape_cast %69 : vector<1x256xi1> to vector<1x256xi1>
    %77 = vector.broadcast %76 : vector<1x256xi1> to vector<8x256xi1>
    %78 = vector.shape_cast %75 : vector<8x1xi32> to vector<8x1xi32>
    %79 = vector.broadcast %78 : vector<8x1xi32> to vector<8x256xi32>
    %80 = arith.select %77, %79, %67 : vector<8x256xi1>, vector<8x256xi32>
    %c1_i32_23 = arith.constant 1 : i32
    %81 = vector.broadcast %c1_i32_23 : i32 to vector<1x256xi32>
    %82 = arith.cmpi eq, %4, %81 : vector<1x256xi32>
    %c64_i32_24 = arith.constant 64 : i32
    %83 = vector.shape_cast %82 : vector<1x256xi1> to vector<1x256xi1>
    %84 = vector.broadcast %83 : vector<1x256xi1> to vector<8x256xi1>
    %85 = vector.broadcast %c64_i32_24 : i32 to vector<8x256xi32>
    %86 = arith.select %84, %67, %85 : vector<8x256xi1>, vector<8x256xi32>
    %cst_25 = arith.constant dense<2147483647> : vector<8xi32>
    %87 = vector.multi_reduction <minsi>, %86, %cst_25 [1] : vector<8x256xi32> to vector<8xi32>
    %88 = vector.shape_cast %87 : vector<8xi32> to vector<8x1xi32>
    %89 = vector.shape_cast %82 : vector<1x256xi1> to vector<1x256xi1>
    %90 = vector.broadcast %89 : vector<1x256xi1> to vector<8x256xi1>
    %91 = vector.shape_cast %88 : vector<8x1xi32> to vector<8x1xi32>
    %92 = vector.broadcast %91 : vector<8x1xi32> to vector<8x256xi32>
    %93 = arith.select %90, %92, %80 : vector<8x256xi1>, vector<8x256xi32>
    %c2_i32_26 = arith.constant 2 : i32
    %94 = vector.broadcast %c2_i32_26 : i32 to vector<1x256xi32>
    %95 = arith.cmpi eq, %4, %94 : vector<1x256xi32>
    %c64_i32_27 = arith.constant 64 : i32
    %96 = vector.shape_cast %95 : vector<1x256xi1> to vector<1x256xi1>
    %97 = vector.broadcast %96 : vector<1x256xi1> to vector<8x256xi1>
    %98 = vector.broadcast %c64_i32_27 : i32 to vector<8x256xi32>
    %99 = arith.select %97, %67, %98 : vector<8x256xi1>, vector<8x256xi32>
    %cst_28 = arith.constant dense<2147483647> : vector<8xi32>
    %100 = vector.multi_reduction <minsi>, %99, %cst_28 [1] : vector<8x256xi32> to vector<8xi32>
    %101 = vector.shape_cast %100 : vector<8xi32> to vector<8x1xi32>
    %102 = vector.shape_cast %95 : vector<1x256xi1> to vector<1x256xi1>
    %103 = vector.broadcast %102 : vector<1x256xi1> to vector<8x256xi1>
    %104 = vector.shape_cast %101 : vector<8x1xi32> to vector<8x1xi32>
    %105 = vector.broadcast %104 : vector<8x1xi32> to vector<8x256xi32>
    %106 = arith.select %103, %105, %93 : vector<8x256xi1>, vector<8x256xi32>
    %c3_i32_29 = arith.constant 3 : i32
    %107 = vector.broadcast %c3_i32_29 : i32 to vector<1x256xi32>
    %108 = arith.cmpi eq, %4, %107 : vector<1x256xi32>
    %c64_i32_30 = arith.constant 64 : i32
    %109 = vector.shape_cast %108 : vector<1x256xi1> to vector<1x256xi1>
    %110 = vector.broadcast %109 : vector<1x256xi1> to vector<8x256xi1>
    %111 = vector.broadcast %c64_i32_30 : i32 to vector<8x256xi32>
    %112 = arith.select %110, %67, %111 : vector<8x256xi1>, vector<8x256xi32>
    %cst_31 = arith.constant dense<2147483647> : vector<8xi32>
    %113 = vector.multi_reduction <minsi>, %112, %cst_31 [1] : vector<8x256xi32> to vector<8xi32>
    %114 = vector.shape_cast %113 : vector<8xi32> to vector<8x1xi32>
    %115 = vector.shape_cast %108 : vector<1x256xi1> to vector<1x256xi1>
    %116 = vector.broadcast %115 : vector<1x256xi1> to vector<8x256xi1>
    %117 = vector.shape_cast %114 : vector<8x1xi32> to vector<8x1xi32>
    %118 = vector.broadcast %117 : vector<8x1xi32> to vector<8x256xi32>
    %119 = arith.select %116, %118, %106 : vector<8x256xi1>, vector<8x256xi32>
    %120 = vector.broadcast %5 : vector<1x256xi32> to vector<8x256xi32>
    %121 = arith.cmpi eq, %120, %119 : vector<8x256xi32>
    %122 = arith.extui %121 : vector<8x256xi1> to vector<8x256xi32>
    %123 = arith.sitofp %122 : vector<8x256xi32> to vector<8x256xf32>
    %cst_32 = arith.constant dense<0.000000e+00> : vector<8x128xf32>
    %124 = tpu.matmul %123, %2, %cst_32 {dimension_numbers = #tpu.dot_dimension_numbers<[1], [0], [0], [1], [0, 0, 1, 1], [], []>, precision = #tpu.contract_precision<fp32>} : vector<8x256xf32>, vector<256x128xf32>, vector<8x128xf32> -> vector<8x128xf32>
    %c0_33 = arith.constant 0 : index
    %c0_34 = arith.constant 0 : index
    %125 = vector.load %arg5[%c0_33, %c0_34] : memref<256x4xf32, #tpu.memory_space<vmem>>, vector<256x4xf32>
    %cst_35 = arith.constant dense<0.000000e+00> : vector<8x4xf32>
    %126 = tpu.matmul %123, %125, %cst_35 {dimension_numbers = #tpu.dot_dimension_numbers<[1], [0], [0], [1], [0, 0, 1, 1], [], []>} : vector<8x256xf32>, vector<256x4xf32>, vector<8x4xf32> -> vector<8x4xf32>
    %c0_36 = arith.constant 0 : index
    %c0_37 = arith.constant 0 : index
    %127 = vector.load %arg8[%c0_36, %c0_37] : memref<8x128xf32, #tpu.memory_space<vmem>>, vector<8x128xf32>
    tpu.vector_store %arg8[%c0_36, %c0_37], %124 {strides = array<i32>} : memref<8x128xf32, #tpu.memory_space<vmem>>, vector<8x128xf32>,
    %128 = arith.fptosi %126 : vector<8x4xf32> to vector<8x4xi32>
    %c0_38 = arith.constant 0 : index
    %c0_39 = arith.constant 0 : index
    %129 = vector.load %arg9[%c0_38, %c0_39] : memref<8x4xi32, #tpu.memory_space<vmem>>, vector<8x4xi32>
    tpu.vector_store %arg9[%c0_38, %c0_39], %128 {strides = array<i32>} : memref<8x4xi32, #tpu.memory_space<vmem>>, vector<8x4xi32>,
    %130 = arith.subf %124, %0 : vector<8x128xf32>
    %131 = arith.mulf %130, %130 : vector<8x128xf32>
    %cst_40 = arith.constant dense<0.000000e+00> : vector<128xf32>
    %132 = vector.multi_reduction <add>, %131, %cst_40 [0] : vector<8x128xf32> to vector<128xf32>
    %133 = vector.shape_cast %132 : vector<128xf32> to vector<1x128xf32>
    %c0_41 = arith.constant 0 : index
    %c0_42 = arith.constant 0 : index
    %134 = vector.load %arg10[%c0_41, %c0_42] : memref<1x128xf32, #tpu.memory_space<vmem>>, vector<1x128xf32>
    tpu.vector_store %arg10[%c0_41, %c0_42], %133 {strides = array<i32>} : memref<1x128xf32, #tpu.memory_space<vmem>>, vector<1x128xf32>,
    return
  }
  func.func @transform_0(%arg0: i32) -> (i32, i32) {
    %c0_i32 = arith.constant 0 : i32
    %c0_i32_0 = arith.constant 0 : i32
    return %arg0, %c0_i32 : i32, i32
  }
  func.func @transform_1(%arg0: i32) -> (i32, i32) {
    %c0_i32 = arith.constant 0 : i32
    %c0_i32_0 = arith.constant 0 : i32
    %c0_i32_1 = arith.constant 0 : i32
    return %c0_i32, %c0_i32_0 : i32, i32
  }
  func.func @transform_2(%arg0: i32) -> (i32, i32) {
    %c0_i32 = arith.constant 0 : i32
    %c0_i32_0 = arith.constant 0 : i32
    %c0_i32_1 = arith.constant 0 : i32
    return %c0_i32, %c0_i32_0 : i32, i32
  }
  func.func @transform_3(%arg0: i32) -> (i32, i32) {
    %c0_i32 = arith.constant 0 : i32
    %c0_i32_0 = arith.constant 0 : i32
    %c0_i32_1 = arith.constant 0 : i32
    return %c0_i32, %c0_i32_0 : i32, i32
  }
  func.func @transform_4(%arg0: i32) -> (i32, i32) {
    %c0_i32 = arith.constant 0 : i32
    %c0_i32_0 = arith.constant 0 : i32
    %c0_i32_1 = arith.constant 0 : i32
    return %c0_i32, %c0_i32_0 : i32, i32
  }
  func.func @transform_5(%arg0: i32) -> (i32, i32) {
    %c0_i32 = arith.constant 0 : i32
    %c0_i32_0 = arith.constant 0 : i32
    %c0_i32_1 = arith.constant 0 : i32
    return %c0_i32, %c0_i32_0 : i32, i32
  }
  func.func @transform_6(%arg0: i32) -> (i32, i32) {
    %c0_i32 = arith.constant 0 : i32
    %c0_i32_0 = arith.constant 0 : i32
    %c0_i32_1 = arith.constant 0 : i32
    return %c0_i32, %c0_i32_0 : i32, i32
  }
  func.func @transform_7(%arg0: i32) -> (i32, i32) {
    %c0_i32 = arith.constant 0 : i32
    %c0_i32_0 = arith.constant 0 : i32
    return %arg0, %c0_i32 : i32, i32
  }
  func.func @transform_8(%arg0: i32) -> (i32, i32) {
    %c0_i32 = arith.constant 0 : i32
    %c0_i32_0 = arith.constant 0 : i32
    return %arg0, %c0_i32 : i32, i32
  }
  func.func @transform_9(%arg0: i32) -> (i32, i32) {
    %c0_i32 = arith.constant 0 : i32
    %c0_i32_0 = arith.constant 0 : i32
    return %arg0, %c0_i32 : i32, i32
  }
}

</mosaic_0001>

<bundles_post_ra>
// kernel: tile.8
= control target key start
LH: loop header
LB: loop body
LE: loop exit
PB: predicated region body
PF: predicated region fallthrough
CT: control target
= control target key end

     0   :  { %s22_s0 = inlined_call_operand.vmem [shape: f32[64], index: 0, kind: input, shape index: {}]   ;;  %s23_s1 = inlined_call_operand.vmem [shape: f32[4,64], index: 1, kind: output, shape index: {}]  }
   0x1   :  { %v4_v0 = vld [vmem:[%s22_s0] ss:$0 sm:$0xff] }
   0x2   :  { %5 = vst [vmem:[%s23_s1] sm:$0xf] %v4_v0 }

// kernel: tile.9
= control target key start
LH: loop header
LB: loop body
LE: loop exit
PB: predicated region body
PF: predicated region fallthrough
CT: control target
= control target key end

     0   :  { %s6_s8 = smov 3  ;;  %vm8_vm0 = vcmask 523264   ;;  %s30_s9 = smov 64   ;;  %vm15_vm1 = vcmask 1048064   ;;  %s50_s0 = inlined_call_operand.vmem [shape: f32[4,64], index: 0, kind: input, shape index: {}]   ;;  %s51_s1 = inlined_call_operand.vmem [shape: f32[1,256], index: 1, kind: output, shape index: {}]  }
   0x1   :  { %v4_v0 = vld [vmem:[%s50_s0] sm:$0xf]  ;;  %s11_s0 = smov 3 }
   0x2   :  { %5 = vst [vmem:[#allocation1] sm:$0xf] %v4_v0 }
   0x9   :  { %v12_v1 = vld [vmem:[#allocation1 + $0x1] ss:$2 sm:%s11_s0]   ;;  %v7_v2 = vld [vmem:[#allocation1] ss:$2 sm:%s6_s8]  }
   0xa   :  { %13 = vrot.lane.b32.xlu0 %v12_v1, %s30_s9  ;;  %9 = vst.msk [vmem:[#allocation0] ss:$8 sm:$0x3] %vm8_vm0, %v7_v2  }
  0x7c   :  { %v14_v3 = vpop.permute.xlu0 %13  }
  0x7d   :  { %16 = vst.msk [vmem:[#allocation0] ss:$8 sm:$0x3] %vm15_vm1, %v14_v3  }
  0x84   :  { %v20_v4 = vld [vmem:[#allocation0] sm:$0x1]  ;;  %v24_v5 = vld [vmem:[#allocation0 + $0x8] sm:$0x1] }
  0x85   :  { %22 = vst [vmem:[%s51_s1] sm:$0x1] %v20_v4  ;;  %28 = vst [vmem:[%s51_s1 + $0x1] sm:$0x1] %v24_v5 }

// kernel: quantized_embedding_forward.1
= control target key start
LH: loop header
LB: loop body
LE: loop exit
PB: predicated region body
PF: predicated region fallthrough
CT: control target
= control target key end

     0   :  { %v4285_v3 = vmov 0.0   ;;  %s4273_s1 = inlined_call_operand.vmem [shape: f32[128,256], index: 1, kind: input, shape index: {}]   ;;  %s4274_s0 = inlined_call_operand.vmem [shape: f32[8,128], index: 0, kind: input, shape index: {}]   ;;  %s4275_s5 = inlined_call_operand.vmem [shape: s32[1,256], index: 5, kind: input, shape index: {}]   ;;  %s4276_s3 = inlined_call_operand.vmem [shape: f32[1,256], index: 3, kind: input, shape index: {}]   ;;  %s4277_s6 = inlined_call_operand.vmem [shape: s32[1,256], index: 6, kind: input, shape index: {}]   ;;  %s4278_s4 = inlined_call_operand.vmem [shape: f32[256,4], index: 4, kind: input, shape index: {}]   ;;  %s4279_s2 = inlined_call_operand.vmem [shape: f32[256,128], index: 2, kind: input, shape index: {}]   ;;  %s4280_s8 = inlined_call_operand.vmem [shape: s32[8,4], index: 8, kind: output, shape index: {1}]   ;;  %s4281_s7 = inlined_call_operand.vmem [shape: f32[8,128], index: 7, kind: output, shape index: {0}]   ;;  %s4282_s9 = inlined_call_operand.vmem [shape: f32[1,128], index: 9, kind: output, shape index: {2}]  }
   0x1   :  { %v31_v0 = vld [vmem:[%s4273_s1 + $0x8] sm:$0xff]  ;;  %v33_v1 = vld [vmem:[%s4273_s1 + $0x18] sm:$0xff]  ;;  %v30_v2 = vld [vmem:[%s4273_s1] sm:$0xff]  ;;  %193 = vmatprep.mubr.f32.mxu0 %v4285_v3 }
   0x2   :  { %v97_v4 = vand.u32 4294901760, %v31_v0  ;;  %v101_v5 = vand.u32 4294901760, %v33_v1  ;;  %v32_v6 = vld [vmem:[%s4273_s1 + $0x10] sm:$0xff]  ;;  %v99_v7 = vand.u32 4294901760, %v30_v2  ;;  %v35_v8 = vld [vmem:[%s4273_s1 + $0x28] sm:$0xff]  ;;  %v37_v9 = vld [vmem:[%s4273_s1 + $0x38] sm:$0xff] }
   0x3   :  { %v103_v10 = vand.u32 4294901760, %v32_v6  ;;  %v105_v11 = vand.u32 4294901760, %v35_v8  ;;  %v109_v12 = vand.u32 4294901760, %v37_v9  ;;  %v34_v13 = vld [vmem:[%s4273_s1 + $0x20] sm:$0xff]  ;;  %v36_v14 = vld [vmem:[%s4273_s1 + $0x30] sm:$0xff]  ;;  %v39_v15 = vld [vmem:[%s4273_s1 + $0x48] sm:$0xff] }
   0x4   :  { %v2898_v16 = vpack.c.bf16 %v101_v5, %v97_v4  ;;  %v41_v17 = vld [vmem:[%s4273_s1 + $0x58] sm:$0xff]  ;;  %v38_v18 = vld [vmem:[%s4273_s1 + $0x40] sm:$0xff]  ;;  %v40_v19 = vld [vmem:[%s4273_s1 + $0x50] sm:$0xff]  ;;  %v107_v23 = vand.u32 4294901760, %v34_v13  ;;  %v111_v24 = vand.u32 4294901760, %v36_v14  ;;  %v113_v25 = vand.u32 4294901760, %v39_v15 }
   0x5   :  { %v2909_v20 = vpack.c.bf16 %v103_v10, %v99_v7  ;;  %v2911_v21 = vpack.c.bf16 %v109_v12, %v105_v11  ;;  %v43_v22 = vld [vmem:[%s4273_s1 + $0x68] sm:$0xff]  ;;  %v117_v26 = vand.u32 4294901760, %v41_v17  ;;  %v115_v27 = vand.u32 4294901760, %v38_v18  ;;  %v45_v29 = vld [vmem:[%s4273_s1 + $0x78] sm:$0xff]  ;;  %v42_v30 = vld [vmem:[%s4273_s1 + $0x60] sm:$0xff] }
   0x6   :  { %4414 = vst [vmem:[#allocation2_spill] sm:$0xff] %v2898_v16  ;;  %2386 = vmatprep.subr.bf16.mxu0 %v2898_v16  ;;  %v119_v28 = vand.u32 4294901760, %v40_v19  ;;  %v2925_v31 = vpack.c.bf16 %v111_v24, %v107_v23  ;;  %v121_v32 = vand.u32 4294901760, %v43_v22  ;;  %v44_v33 = vld [vmem:[%s4273_s1 + $0x70] sm:$0xff]  ;;  %v47_v34 = vld [vmem:[%s4273_s1 + $0x88] sm:$0xff]  ;;  %v49_v35 = vld [vmem:[%s4273_s1 + $0x98] sm:$0xff]  ;;  %v2936_v36 = vsub.f32 %v31_v0, %v97_v4 }
   0x7   :  { %4415 = vst [vmem:[#allocation3_spill] sm:$0xff] %v2909_v20  ;;  %4416 = vst [vmem:[#allocation4_spill] sm:$0xff] %v2911_v21  ;;  %2388 = vmatpush1.bf16.msra.mxu0 %v2909_v20  ;;  %v2938_v37 = vsub.f32 %v33_v1, %v101_v5  ;;  %v2940_v38 = vsub.f32 %v30_v2, %v99_v7  ;;  %v2942_v39 = vpack.c.bf16 %v117_v26, %v113_v25  ;;  %v46_v48 = vld [vmem:[%s4273_s1 + $0x80] sm:$0xff]  ;;  %v48_v49 = vld [vmem:[%s4273_s1 + $0x90] sm:$0xff] }
   0x8   :  { %2390 = vmatprep.subr.bf16.mxu0 %v2911_v21  ;;  %4417 = vst [vmem:[#allocation5_spill] sm:$0xff] %v2925_v31  ;;  %v2944_v40 = vsub.f32 %v32_v6, %v103_v10  ;;  %v2946_v41 = vsub.f32 %v35_v8, %v105_v11  ;;  %v2948_v42 = vpack.c.bf16 %v119_v28, %v115_v27  ;;  %v125_v43 = vand.u32 4294901760, %v45_v29  ;;  %v51_v54 = vld [vmem:[%s4273_s1 + $0xa8] sm:$0xff]  ;;  %v53_v55 = vld [vmem:[%s4273_s1 + $0xb8] sm:$0xff]  ;;  %v50_v56 = vld [vmem:[%s4273_s1 + $0xa0] sm:$0xff] }
   0x9   :  { %4418 = vst [vmem:[#allocation6_spill] sm:$0xff] %v2942_v39  ;;  %v123_v44 = vand.u32 4294901760, %v42_v30  ;;  %v127_v45 = vand.u32 4294901760, %v44_v33  ;;  %v129_v46 = vand.u32 4294901760, %v47_v34  ;;  %v133_v47 = vand.u32 4294901760, %v49_v35  ;;  %v52_v61 = vld [vmem:[%s4273_s1 + $0xb0] sm:$0xff] }
   0xa   :  { %4419 = vst [vmem:[#allocation7_spill] sm:$0xff] %v2948_v42  ;;  %v2957_v50 = vsub.f32 %v37_v9, %v109_v12  ;;  %v2959_v51 = vsub.f32 %v34_v13, %v107_v23  ;;  %v2961_v52 = vsub.f32 %v36_v14, %v111_v24  ;;  %v2964_v53 = vpack.c.bf16 %v125_v43, %v121_v32  ;;  %v55_v62 = vld [vmem:[%s4273_s1 + $0xc8] sm:$0xff]  ;;  %v57_v63 = vld [vmem:[%s4273_s1 + $0xd8] sm:$0xff]  ;;  %v54_v9 = vld [vmem:[%s4273_s1 + $0xc0] sm:$0xff] }
   0xb   :  { %2392 = vmatpush1.bf16.msra.mxu0 %v2925_v31  ;;  %v2975_v57 = vsub.f32 %v39_v15, %v113_v25  ;;  %v2977_v58 = vsub.f32 %v41_v17, %v117_v26  ;;  %v2979_v59 = vsub.f32 %v38_v18, %v115_v27  ;;  %v2981_v60 = vsub.f32 %v40_v19, %v119_v28  ;;  %v56_v10 = vld [vmem:[%s4273_s1 + $0xd0] sm:$0xff]  ;;  %v29_v26 = vld [vmem:[%s4274_s0] sm:$0xff] }
   0xc   :  { %2394 = vmatprep.subr.bf16.mxu0 %v2942_v39  ;;  %4420 = vst [vmem:[#allocation8_spill] sm:$0xff] %v2964_v53  ;;  %v2992_v0 = vsub.f32 %v43_v22, %v121_v32  ;;  %v2994_v1 = vsub.f32 %v45_v29, %v125_v43  ;;  %v131_v2 = vand.u32 4294901760, %v46_v48  ;;  %v135_v4 = vand.u32 4294901760, %v48_v49  ;;  %v59_v43 = vld [vmem:[%s4273_s1 + $0xe8] sm:$0xff] }
   0xd   :  { %v2997_v5 = vpack.c.bf16 %v127_v45, %v123_v44  ;;  %v2999_v6 = vpack.c.bf16 %v133_v47, %v129_v46  ;;  %v137_v7 = vand.u32 4294901760, %v51_v54  ;;  %v141_v8 = vand.u32 4294901760, %v53_v55 }
   0xe   :  { %v139_v11 = vand.u32 4294901760, %v50_v56  ;;  %v143_v12 = vand.u32 4294901760, %v52_v61  ;;  %v145_v13 = vand.u32 4294901760, %v55_v62  ;;  %v149_v14 = vand.u32 4294901760, %v57_v63 }
   0xf   :  { %2396 = vmatpush1.bf16.msra.mxu0 %v2948_v42  ;;  %4421 = vst [vmem:[#allocation9_spill] sm:$0xff] %v2997_v5  ;;  %4422 = vst [vmem:[#allocation10_spill] sm:$0xff] %v2999_v6  ;;  %v3008_v15 = vsub.f32 %v42_v30, %v123_v44  ;;  %v3010_v17 = vsub.f32 %v44_v33, %v127_v45  ;;  %v3012_v18 = vsub.f32 %v47_v34, %v129_v46  ;;  %v61_v45 = vld [vmem:[%s4273_s1 + $0xf8] sm:$0xff] }
  0x10   :  { %2398 = vmatprep.subr.bf16.mxu0 %v2964_v53  ;;  %v3014_v19 = vsub.f32 %v49_v35, %v133_v47  ;;  %v3016_v22 = vpack.c.bf16 %v135_v4, %v131_v2  ;;  %v3018_v23 = vsub.f32 %v46_v48, %v131_v2  ;;  %v147_v24 = vand.u32 4294901760, %v54_v9 }
  0x11   :  { %v151_v25 = vand.u32 4294901760, %v56_v10  ;;  %v3024_v27 = vsub.f32 %v48_v49, %v135_v4  ;;  %v3026_v28 = vpack.c.bf16 %v141_v8, %v137_v7  ;;  %v3028_v29 = vsub.f32 %v51_v54, %v137_v7 }
  0x12   :  { %4423 = vst [vmem:[#allocation11_spill] sm:$0xff] %v3016_v22  ;;  %v3030_v30 = vsub.f32 %v53_v55, %v141_v8  ;;  %v3033_v32 = vpack.c.bf16 %v143_v12, %v139_v11  ;;  %v3035_v33 = vsub.f32 %v50_v56, %v139_v11  ;;  %v3037_v34 = vsub.f32 %v52_v61, %v143_v12  ;;  %v58_v56 = vld [vmem:[%s4273_s1 + $0xe0] sm:$0xff]  ;;  %v3065_v61 = vld [vmem:[%s4273_s1 + $0xf0] sm:$0xff] }
  0x13   :  { %2400 = vmatpush1.bf16.msra.mxu0 %v2997_v5  ;;  %4424 = vst [vmem:[#allocation12_spill] sm:$0xff] %v3026_v28  ;;  %v3039_v35 = vpack.c.bf16 %v149_v14, %v145_v13  ;;  %v3044_v44 = vsub.f32 %v55_v62, %v145_v13  ;;  %v4283_v46 = vand.u32 4294901760, %v2936_v36  ;;  %v4284_v47 = vand.u32 4294901760, %v2938_v37 }
  0x14   :  { %2402 = vmatprep.subr.bf16.mxu0 %v2999_v6  ;;  %4425 = vst [vmem:[#allocation13_spill] sm:$0xff] %v3033_v32  ;;  %v3051_v48 = vand.u32 4294901760, %v29_v26  ;;  %v3053_v49 = vsub.f32 %v57_v63, %v149_v14  ;;  %v3055_v54 = vpack.c.bf16 %v151_v25, %v147_v24  ;;  %v3057_v55 = vsub.f32 %v54_v9, %v147_v24 }
  0x15   :  { %4426 = vst [vmem:[#allocation14_spill] sm:$0xff] %v3039_v35  ;;  %v4287_v62 = vand.u32 4294901760, %v2940_v38  ;;  %v3069_v2 = vsub.f32 %v56_v10, %v151_v25  ;;  %v153_v63 = vand.u32 4294901760, %v59_v43  ;;  %v208_v4 = vsub.f32 %v2936_v36, %v4283_v46 }
  0x16   :  { %4427 = vst [vmem:[#allocation15_spill] sm:$0xff] %v3053_v49  ;;  %4428 = vst [vmem:[#allocation16_spill] sm:$0xff] %v3055_v54  ;;  %v220_v7 = vsub.f32 %v2938_v37, %v4284_v47  ;;  %v157_v8 = vand.u32 4294901760, %v61_v45  ;;  %v3079_v9 = vsub.f32 %v29_v26, %v3051_v48  ;;  %v4288_v11 = vand.u32 4294901760, %v2944_v40 }
  0x17   :  { %4429 = vst [vmem:[#allocation17_spill] sm:$0xff] %v3057_v55  ;;  %2404 = vmatpush1.bf16.msra.mxu0 %v3016_v22  ;;  %4430 = vst [vmem:[#allocation18_spill] sm:$0xff] %v3069_v2  ;;  %v4293_v10 = vand.u32 4294901760, %v2946_v41  ;;  %v155_v12 = vand.u32 4294901760, %v58_v56  ;;  %v4294_v14 = vand.u32 4294901760, %v2957_v50  ;;  %v209_v25 = vand.u32 4294901760, %v208_v4 }
  0x18   :  { %2406 = vmatprep.subr.bf16.mxu0 %v3026_v28  ;;  %4431 = vst [vmem:[#allocation19_spill] sm:$0xff] %v3079_v9  ;;  %v221_v46 = vand.u32 4294901760, %v220_v7  ;;  %v214_v26 = vsub.f32 %v2940_v38, %v4287_v62  ;;  %v226_v3 = vsub.f32 %v2944_v40, %v4288_v11  ;;  %v4303_v7 = vand.u32 4294901760, %v2961_v52 }
  0x19   :  { %v232_v13 = vsub.f32 %v2946_v41, %v4293_v10  ;;  %v244_v4 = vsub.f32 %v2957_v50, %v4294_v14  ;;  %v3102_v47 = vpack.c.bf16 %v157_v8, %v153_v63  ;;  %v3104_v62 = vsub.f32 %v59_v43, %v153_v63 }
  0x1a   :  { %v3106_v24 = vsub.f32 %v61_v45, %v157_v8  ;;  %v4435_v10 = vand.u32 4294901760, %v2959_v51  ;;  %v4308_v22 = vand.u32 4294901760, %v2977_v58  ;;  %v2417_v43 = vpack.c.bf16 %v221_v46, %v209_v25 }
  0x1b   :  { %2408 = vmatpush1.bf16.msra.mxu0 %v3033_v32  ;;  %4432 = vst [vmem:[#allocation20_spill] sm:$0xff] %v3102_v47  ;;  %v4433_v32 = vand.u32 4294901760, %v3065_v61  ;;  %v4436_v45 = vand.u32 4294901760, %v3079_v9  ;;  %v215_v8 = vand.u32 4294901760, %v214_v26  ;;  %v233_v6 = vand.u32 4294901760, %v232_v13 }
  0x1c   :  { %2410 = vmatprep.subr.bf16.mxu0 %v3039_v35  ;;  %v238_v14 = vsub.f32 %v2959_v51, %v4435_v10  ;;  %v250_v35 = vsub.f32 %v2961_v52, %v4303_v7  ;;  %v245_v5 = vand.u32 4294901760, %v244_v4  ;;  %v4311_v10 = vand.u32 4294901760, %v2981_v60 }
  0x1d   :  { %v3111_v28 = vpack.c.bf16 %v4433_v32, %v155_v12  ;;  %v197_v63 = vsub.f32 %v3079_v9, %v4436_v45  ;;  %v227_v32 = vand.u32 4294901760, %v226_v3  ;;  %v4437_v7 = vand.u32 4294901760, %v2975_v57 }
  0x1e   :  { %v268_v25 = vsub.f32 %v2977_v58, %v4308_v22  ;;  %v4316_v26 = vand.u32 4294901760, %v2992_v0  ;;  %v4321_v45 = vand.u32 4294901760, %v2994_v1  ;;  %v239_v11 = vand.u32 4294901760, %v238_v14 }
  0x1f   :  { %4434 = vst [vmem:[#allocation21_spill] sm:$0xff] %v3111_v28  ;;  %2412 = vmatpush1.bf16.msra.mxu0 %v3055_v54  ;;  %v256_v46 = vsub.f32 %v2975_v57, %v4437_v7  ;;  %v251_v3 = vand.u32 4294901760, %v250_v35  ;;  %v4438_v13 = vand.u32 4294901760, %v2979_v59  ;;  %v198_v54 = vand.u32 4294901760, %v197_v63 }
  0x20   :  { %2414 = vmatprep.subr.bf16.mxu0 %v3102_v47  ;;  %v274_v47 = vsub.f32 %v2981_v60, %v4311_v10  ;;  %v280_v7 = vsub.f32 %v2992_v0, %v4316_v26  ;;  %v292_v22 = vsub.f32 %v2994_v1, %v4321_v45  ;;  %v3149_v35 = vsub.f32 %v58_v56, %v155_v12 }
  0x21   :  { %v262_v4 = vsub.f32 %v2979_v59, %v4438_v13  ;;  %v2419_v13 = vpack.c.bf16 %v227_v32, %v215_v8  ;;  %v4332_v53 = vand.u32 4294901760, %v3010_v17  ;;  %v4326_v10 = vand.u32 4294901760, %v3012_v18 }
  0x22   :  { %v2421_v63 = vpack.c.bf16 %v245_v5, %v233_v6  ;;  %v257_v42 = vand.u32 4294901760, %v256_v46  ;;  %v269_v39 = vand.u32 4294901760, %v268_v25  ;;  %v4325_v26 = vand.u32 4294901760, %v3014_v19 }
  0x23   :  { %2416 = vmatpush1.bf16.msra.mxu0 %v3111_v28  ;;  %v2423_v31 = vpack.c.bf16 %v251_v3, %v239_v11  ;;  %v263_v21 = vand.u32 4294901760, %v262_v4  ;;  %v275_v45 = vand.u32 4294901760, %v274_v47  ;;  %v4324_v14 = vand.u32 4294901760, %v3018_v23 }
  0x24   :  { %2418 = vmatprep.subr.bf16.mxu0 %v2417_v43  ;;  %v281_v28 = vand.u32 4294901760, %v280_v7  ;;  %v293_v56 = vand.u32 4294901760, %v292_v22  ;;  %v4439_v12 = vand.u32 4294901760, %v3008_v15  ;;  %v4327_v32 = vand.u32 4294901760, %v3024_v27 }
  0x25   :  { %v298_v5 = vsub.f32 %v3010_v17, %v4332_v53  ;;  %v304_v6 = vsub.f32 %v3012_v18, %v4326_v10  ;;  %v316_v47 = vsub.f32 %v3014_v19, %v4325_v26  ;;  %v4440_v22 = vmov 0.0  }
  0x26   :  { %199 = vmatmul.mubr.f32.vlgmr.msra.gmra.mrb[0].mxu0 %v198_v54  ;;  %v286_v8 = vsub.f32 %v3008_v15, %v4439_v12  ;;  %v2425_v54 = vpack.c.bf16 %v269_v39, %v257_v42  ;;  %v310_v11 = vsub.f32 %v3018_v23, %v4324_v14  ;;  %v4331_v43 = vand.u32 4294901760, %v3028_v29 }
  0x27   :  { %2420 = vmatpush1.bf16.msra.mxu0 %v2419_v13  ;;  %429 = vmatprep.mubr.f32.mxu0 %v4440_v22  ;;  %v4330_v46 = vand.u32 4294901760, %v3030_v30  ;;  %v4441_v25 = vand.u32 4294901760, %v3065_v61  ;;  %v322_v4 = vsub.f32 %v3024_v27, %v4327_v32  ;;  %v4328_v7 = vand.u32 4294901760, %v3035_v33 }
  0x28   :  { %2422 = vmatprep.subr.bf16.mxu0 %v2421_v63  ;;  %v4329_v39 = vand.u32 4294901760, %v3037_v34  ;;  %v2427_v42 = vpack.c.bf16 %v275_v45, %v263_v21  ;;  %v2429_v13 = vpack.c.bf16 %v293_v56, %v281_v28  ;;  %v287_v63 = vand.u32 4294901760, %v286_v8 }
  0x29   :  { %v3177_v3 = vsub.f32 %v3065_v61, %v4441_v25  ;;  %v4335_v12 = vand.u32 4294901760, %v3044_v44  ;;  %v299_v14 = vand.u32 4294901760, %v298_v5  ;;  %v305_v26 = vand.u32 4294901760, %v304_v6 }
  0x2a   :  { %v317_v10 = vand.u32 4294901760, %v316_v47  ;;  %v363_v61 = vand.u32 4294901760, %v3053_v49  ;;  %v311_v25 = vand.u32 4294901760, %v310_v11  ;;  %v328_v32 = vsub.f32 %v3028_v29, %v4331_v43 }
  0x2b   :  { %2424 = vmatpush1.bf16.msra.mxu0 %v2423_v31  ;;  %v340_v21 = vsub.f32 %v3030_v30, %v4330_v46  ;;  %v357_v28 = vand.u32 4294901760, %v3057_v55  ;;  %v323_v45 = vand.u32 4294901760, %v322_v4  ;;  %v334_v31 = vsub.f32 %v3035_v33, %v4328_v7 }
  0x2c   :  { %2426 = vmatprep.subr.bf16.mxu0 %v2425_v54  ;;  %v346_v56 = vsub.f32 %v3037_v34, %v4329_v39  ;;  %v369_v8 = vand.u32 4294901760, %v3069_v2  ;;  %v352_v5 = vsub.f32 %v3044_v44, %v4335_v12  ;;  %v364_v6 = vsub.f32 %v3053_v49, %v363_v61 }
  0x2d   :  { %v375_v47 = vand.u32 4294901760, %v3104_v62  ;;  %v387_v54 = vand.u32 4294901760, %v3106_v24  ;;  %v2431_v11 = vpack.c.bf16 %v299_v14, %v287_v63  ;;  %v358_v4 = vsub.f32 %v3057_v55, %v357_v28 }
  0x2e   :  { %v370_v7 = vsub.f32 %v3069_v2, %v369_v8  ;;  %v381_v39 = vand.u32 4294901760, %v3149_v35  ;;  %v2433_v46 = vpack.c.bf16 %v317_v10, %v305_v26  ;;  %v329_v43 = vand.u32 4294901760, %v328_v32 }
  0x2f   :  { %2428 = vmatpush1.bf16.msra.mxu0 %v2427_v42  ;;  %v341_v53 = vand.u32 4294901760, %v340_v21  ;;  %v2435_v20 = vpack.c.bf16 %v323_v45, %v311_v25  ;;  %v335_v12 = vand.u32 4294901760, %v334_v31  ;;  %v347_v9 = vand.u32 4294901760, %v346_v56 }
  0x30   :  { %2430 = vmatprep.subr.bf16.mxu0 %v2429_v13  ;;  %v353_v16 = vand.u32 4294901760, %v352_v5  ;;  %v365_v49 = vand.u32 4294901760, %v364_v6  ;;  %v376_v22 = vsub.f32 %v3104_v62, %v375_v47  ;;  %v388_v42 = vsub.f32 %v3106_v24, %v387_v54 }
  0x31   :  { %v359_v14 = vand.u32 4294901760, %v358_v4  ;;  %v371_v63 = vand.u32 4294901760, %v370_v7  ;;  %v382_v2 = vsub.f32 %v3149_v35, %v381_v39  ;;  %v393_v55 = vand.u32 4294901760, %v3177_v3 }
  0x32   :  { %v2437_v10 = vpack.c.bf16 %v341_v53, %v329_v43  ;;  %v2439_v26 = vpack.c.bf16 %v347_v9, %v335_v12  ;;  %v2441_v32 = vpack.c.bf16 %v365_v49, %v353_v16  ;;  %v377_v13 = vand.u32 4294901760, %v376_v22 }
  0x33   :  { %2432 = vmatpush1.bf16.msra.mxu0 %v2431_v11  ;;  %v389_v25 = vand.u32 4294901760, %v388_v42  ;;  %v2443_v21 = vpack.c.bf16 %v371_v63, %v359_v14  ;;  %v383_v45 = vand.u32 4294901760, %v382_v2  ;;  %v394_v31 = vsub.f32 %v3177_v3, %v393_v55 }
  0x34   :  { %2434 = vmatprep.subr.bf16.mxu0 %v2433_v46  ;;  %v4442_v56 = vand.u32 4294901760, %v2936_v36  ;;  %v4443_v5 = vand.u32 4294901760, %v2938_v37  ;;  %v4444_v6 = vand.u32 4294901760, %v2940_v38  ;;  %v4445_v53 = vand.u32 4294901760, %v2944_v40 }
  0x35   :  { %v4446_v16 = vand.u32 4294901760, %v2946_v41  ;;  %v4448_v2 = vand.u32 4294901760, %v2959_v51  ;;  %v4449_v22 = vand.u32 4294901760, %v2961_v52  ;;  %v4450_v46 = vand.u32 4294901760, %v2975_v57 }
  0x36   :  { %v3218_v7 = vpack.c.bf16 %v4443_v5, %v4442_v56  ;;  %v3224_v9 = vpack.c.bf16 %v4445_v53, %v4444_v6  ;;  %v4451_v12 = vand.u32 4294901760, %v2977_v58  ;;  %v4452_v4 = vand.u32 4294901760, %v2979_v59 }
  0x37   :  { %2436 = vmatpush1.bf16.msra.mxu0 %v2435_v20  ;;  %v4447_v20 = vand.u32 4294901760, %v2957_v50  ;;  %v3236_v43 = vpack.c.bf16 %v4449_v22, %v4448_v2  ;;  %v4453_v42 = vand.u32 4294901760, %v2981_v60  ;;  %v4454_v63 = vand.u32 4294901760, %v2992_v0 }
  0x38   :  { %2438 = vmatprep.subr.bf16.mxu0 %v2437_v10  ;;  %v3242_v11 = vpack.c.bf16 %v4451_v12, %v4450_v46  ;;  %v4455_v10 = vand.u32 4294901760, %v2994_v1  ;;  %v4456_v5 = vand.u32 4294901760, %v3008_v15  ;;  %v4457_v6 = vand.u32 4294901760, %v3010_v17 }
  0x39   :  { %v3230_v49 = vpack.c.bf16 %v4447_v20, %v4446_v16  ;;  %v3248_v14 = vpack.c.bf16 %v4453_v42, %v4452_v4  ;;  %v4458_v16 = vand.u32 4294901760, %v3012_v18  ;;  %v4459_v20 = vand.u32 4294901760, %v3014_v19 }
  0x3a   :  { %v3254_v56 = vpack.c.bf16 %v4455_v10, %v4454_v63  ;;  %v3260_v53 = vpack.c.bf16 %v4457_v6, %v4456_v5  ;;  %v4461_v22 = vand.u32 4294901760, %v3018_v23  ;;  %v4462_v46 = vand.u32 4294901760, %v3024_v27 }
  0x3b   :  { %v3266_v2 = vpack.c.bf16 %v4459_v20, %v4458_v16  ;;  %v4464_v4 = vand.u32 4294901760, %v3028_v29  ;;  %v4465_v42 = vand.u32 4294901760, %v3030_v30  ;;  %v4466_v10 = vand.u32 4294901760, %v3035_v33  ;;  %2440 = vmatpush1.bf16.msra.mxu0 %v2439_v26 }
  0x3c   :  { %v3272_v12 = vpack.c.bf16 %v4462_v46, %v4461_v22  ;;  %v4467_v5 = vand.u32 4294901760, %v3037_v34  ;;  %v4468_v16 = vand.u32 4294901760, %v3044_v44  ;;  %v3290_v22 = vpack.c.bf16 %v369_v8, %v357_v28  ;;  %2442 = vmatprep.subr.bf16.mxu0 %v2441_v32  ;;  %v4487_v8 = vld [vmem:[#allocation16_spill] sm:$0xff] }
  0x3d   :  { %4460 = vst [vmem:[#allocation22_spill] sm:$0xff] %v3266_v2  ;;  %v3278_v63 = vpack.c.bf16 %v4465_v42, %v4464_v4  ;;  %v395_v2 = vand.u32 4294901760, %v394_v31  ;;  %v3292_v46 = vpack.c.bf16 %v387_v54, %v375_v47  ;;  %v2445_v4 = vpack.c.bf16 %v389_v25, %v377_v13  ;;  %v4488_v47 = vld [vmem:[#allocation20_spill] sm:$0xff]  ;;  %v4489_v54 = vld [vmem:[#allocation21_spill] sm:$0xff] }
  0x3e   :  { %4463 = vst [vmem:[#allocation23_spill] sm:$0xff] %v3272_v12  ;;  %v3284_v6 = vpack.c.bf16 %v4467_v5, %v4466_v10  ;;  %v3288_v20 = vpack.c.bf16 %v363_v61, %v4468_v16  ;;  %v3294_v12 = vpack.c.bf16 %v393_v55, %v381_v39  ;;  %v2449_v10 = vpack.c.bf16 %v2938_v37, %v2936_v36 }
  0x3f   :  { %2444 = vmatpush1.bf16.msra.mxu0 %v2443_v21  ;;  %v2447_v42 = vpack.c.bf16 %v395_v2, %v383_v45  ;;  %v2451_v61 = vpack.c.bf16 %v2944_v40, %v2940_v38  ;;  %v2453_v28 = vpack.c.bf16 %v2957_v50, %v2946_v41  ;;  %v2455_v55 = vpack.c.bf16 %v2961_v52, %v2959_v51  ;;  %v95_v21 = vld [vmem:[%s4275_s5] sm:$0x3] }
  0x40   :  { %2446 = vmatprep.subr.bf16.mxu0 %v2445_v4  ;;  %v4469_v39 = vmov 0.0   ;;  %v2457_v36 = vpack.c.bf16 %v2977_v58, %v2975_v57  ;;  %v2459_v37 = vpack.c.bf16 %v2981_v60, %v2979_v59  ;;  %v2461_v38 = vpack.c.bf16 %v2994_v1, %v2992_v0  ;;  %v4470_v57 = vld [vmem:[#allocation15_spill] sm:$0xff]  ;;  %v4471_v59 = vld [vmem:[#allocation17_spill] sm:$0xff]  ;;  %v4472_v60 = vld [vmem:[#allocation18_spill] sm:$0xff] }
  0x41   :  { %v2463_v40 = vpack.c.bf16 %v3010_v17, %v3008_v15  ;;  %v2465_v41 = vpack.c.bf16 %v3014_v19, %v3012_v18  ;;  %v2467_v50 = vpack.c.bf16 %v3024_v27, %v3018_v23  ;;  %v2469_v51 = vpack.c.bf16 %v3030_v30, %v3028_v29  ;;  %v4473_v17 = vld [vmem:[#allocation2_spill] sm:$0xff]  ;;  %v4474_v18 = vld [vmem:[#allocation19_spill] sm:$0xff]  ;;  %v4476_v23 = vld [vmem:[#allocation4_spill] sm:$0xff] }
  0x42   :  { %v2471_v52 = vpack.c.bf16 %v3037_v34, %v3035_v33  ;;  %v2473_v58 = vpack.c.bf16 %v4470_v57, %v3044_v44  ;;  %v2475_v0 = vpack.c.bf16 %v4472_v60, %v4471_v59  ;;  %v2477_v1 = vpack.c.bf16 %v3106_v24, %v3104_v62  ;;  %v4475_v19 = vld [vmem:[#allocation3_spill] sm:$0xff]  ;;  %v4477_v27 = vld [vmem:[#allocation5_spill] sm:$0xff]  ;;  %v4478_v29 = vld [vmem:[#allocation6_spill] sm:$0xff] }
  0x43   :  { %2448 = vmatpush1.bf16.msra.mxu0 %v2447_v42  ;;  %v2479_v15 = vpack.c.bf16 %v3177_v3, %v3149_v35  ;;  %v4479_v30 = vld [vmem:[#allocation7_spill] sm:$0xff]  ;;  %v4480_v33 = vld [vmem:[#allocation8_spill] sm:$0xff]  ;;  %v4481_v34 = vld [vmem:[#allocation9_spill] sm:$0xff]  ;;  %v4490_v26 = vand.u32 4294901760, %v4474_v18  ;;  %v955_v25 = vlaneseq  ;;  %vm1005_vm0 = vcmp.eq.s32.totalorder %v95_v21, 2 }
  0x44   :  { %2450 = vmatprep.subr.bf16.mxu0 %v2449_v10  ;;  %v4482_v44 = vld [vmem:[#allocation10_spill] sm:$0xff]  ;;  %v4483_v62 = vld [vmem:[#allocation11_spill] sm:$0xff]  ;;  %v4484_v24 = vld [vmem:[#allocation12_spill] sm:$0xff]  ;;  %vm967_vm1 = vcmp.eq.s32.totalorder %v95_v21, 0  ;;  %vm1024_vm2 = vcmp.eq.s32.totalorder %v95_v21, 3  ;;  %vm986_vm3 = vcmp.eq.s32.totalorder %v95_v21, 1 }
  0x45   :  { %v4485_v35 = vld [vmem:[#allocation13_spill] sm:$0xff]  ;;  %v4486_v3 = vld [vmem:[#allocation14_spill] sm:$0xff]  ;;  %v4492_v13 = vld [vmem:[#allocation23_spill] sm:$0xff]  ;;  %v956_v45 = vshrl.u32 %v955_v25, 7 }
  0x46   :  { %431 = vmatmul.mubr.f32.vlgmr.msra.gmra.mrb[0].mxu0 %v3051_v48  ;;  %v4491_v32 = vld [vmem:[#allocation22_spill] sm:$0xff] }
  0x47   :  { %2452 = vmatpush1.bf16.msra.mxu0 %v2451_v61  ;;  %565 = vmatprep.mubr.f32.mxu0 %v4469_v39  ;;  %v957_v31 = vsub.s32 0, %v956_v45  ;;  %v2819_v61 = vmov 1.0  }
  0x48   :  { %2454 = vmatprep.subr.bf16.mxu0 %v2453_v28 }
  0x4b   :  { %2456 = vmatpush1.bf16.msra.mxu0 %v2455_v55 }
  0x4c   :  { %2458 = vmatprep.subr.bf16.mxu0 %v2457_v36  ;;  %v4546_v36 = vmov 0.0  }
  0x4f   :  { %2460 = vmatpush1.bf16.msra.mxu0 %v2459_v37 }
  0x50   :  { %2462 = vmatprep.subr.bf16.mxu0 %v2461_v38 }
  0x53   :  { %2464 = vmatpush1.bf16.msra.mxu0 %v2463_v40 }
  0x54   :  { %2466 = vmatprep.subr.bf16.mxu0 %v2465_v41 }
  0x57   :  { %2468 = vmatpush1.bf16.msra.mxu0 %v2467_v50 }
  0x58   :  { %2470 = vmatprep.subr.bf16.mxu0 %v2469_v51 }
  0x5b   :  { %2472 = vmatpush1.bf16.msra.mxu0 %v2471_v52 }
  0x5c   :  { %2474 = vmatprep.subr.bf16.mxu0 %v2473_v58 }
  0x5f   :  { %2476 = vmatpush1.bf16.msra.mxu0 %v2475_v0 }
  0x60   :  { %2478 = vmatprep.subr.bf16.mxu0 %v2477_v1 }
  0x63   :  { %2480 = vmatpush1.bf16.msra.mxu0 %v2479_v15 }
  0x64   :  { %2482 = vmatprep.subr.bf16.mxu0 %v4473_v17 }
  0x66   :  { %568 = vmatmul.mubr.f32.vlgmr.msra.gmra.mrb[0].mxu0 %v4474_v18 }
  0x67   :  { %2484 = vmatpush1.bf16.msra.mxu0 %v4475_v19  ;;  %670 = vmatprep.mubr.f32.mxu0 %v4469_v39 }
  0x68   :  { %2486 = vmatprep.subr.bf16.mxu0 %v4476_v23 }
  0x6b   :  { %2488 = vmatpush1.bf16.msra.mxu0 %v4477_v27 }
  0x6c   :  { %2490 = vmatprep.subr.bf16.mxu0 %v4478_v29 }
  0x6f   :  { %2492 = vmatpush1.bf16.msra.mxu0 %v4479_v30 }
  0x70   :  { %2494 = vmatprep.subr.bf16.mxu0 %v4480_v33 }
  0x73   :  { %2496 = vmatpush1.bf16.msra.mxu0 %v4481_v34 }
  0x74   :  { %2498 = vmatprep.subr.bf16.mxu0 %v4482_v44 }
  0x77   :  { %2500 = vmatpush1.bf16.msra.mxu0 %v4483_v62 }
  0x78   :  { %2502 = vmatprep.subr.bf16.mxu0 %v4484_v24 }
  0x7b   :  { %2504 = vmatpush1.bf16.msra.mxu0 %v4485_v35 }
  0x7c   :  { %2506 = vmatprep.subr.bf16.mxu0 %v4486_v3 }
  0x7f   :  { %2508 = vmatpush1.bf16.msra.mxu0 %v4487_v8 }
  0x80   :  { %2510 = vmatprep.subr.bf16.mxu0 %v4488_v47 }
  0x83   :  { %2512 = vmatpush1.bf16.msra.mxu0 %v4489_v54 }
  0x84   :  { %2514 = vmatprep.subr.bf16.mxu0 %v3218_v7  ;;  %v961_v7 = vsub.s32 1, %v956_v45 }
  0x86   :  { %674 = vmatmul.mubr.f32.vlgmr.msra.gmra.mrb[0].mxu0 %v4490_v26 }
  0x87   :  { %2516 = vmatpush1.bf16.msra.mxu0 %v3224_v9  ;;  %840 = vmatprep.mubr.f32.mxu0 %v4469_v39  ;;  %v2818_v9 = vmov 0  }
  0x88   :  { %2518 = vmatprep.subr.bf16.mxu0 %v3230_v49  ;;  %v1006_v49 = vsel %vm1005_vm0, 1, %v2818_v9 }
  0x8b   :  { %2520 = vmatpush1.bf16.msra.mxu0 %v3236_v43  ;;  %v968_v43 = vsel %vm967_vm1, 1, %v2818_v9 }
  0x8c   :  { %2522 = vmatprep.subr.bf16.mxu0 %v3242_v11  ;;  %v94_v11 = vld [vmem:[%s4276_s3] sm:$0x3] }
  0x8d   :  { %v958_v2 = vrot.slane %v94_v11, %v957_v31 }
  0x8f   :  { %2524 = vmatpush1.bf16.msra.mxu0 %v3248_v14  ;;  %v1010_v14 = vrot.slane %v1006_v49, %v957_v31 }
  0x90   :  { %2526 = vmatprep.subr.bf16.mxu0 %v3254_v56  ;;  %v972_v56 = vrot.slane %v968_v43, %v957_v31 }
  0x91   :  { %vm3392_vm4 = vcmp.eq.s32.totalorder %v1010_v14, 1 }
  0x92   :  { %vm3396_vm5 = vcmp.eq.s32.totalorder %v972_v56, 1 }
  0x93   :  { %2528 = vmatpush1.bf16.msra.mxu0 %v3260_v53  ;;  %v987_v53 = vsel %vm986_vm3, 1, %v2818_v9 }
  0x94   :  { %2530 = vmatprep.subr.bf16.mxu0 %v4491_v32  ;;  %v991_v4 = vrot.slane %v987_v53, %v957_v31  ;;  %v995_v42 = vrot.slane %v987_v53, %v961_v7 }
  0x96   :  { %vm3420_vm10 = vcmp.eq.s32.totalorder %v991_v4, 1  ;;  %vm3424_vm11 = vcmp.eq.s32.totalorder %v995_v42, 1  ;;  %v2020_v4 = vld [vmem:[%s4278_s4 + $0x88] sm:$0xff]  ;;  %v2003_v42 = vld [vmem:[%s4278_s4] sm:$0xff] }
  0x97   :  { %2532 = vmatpush1.bf16.msra.mxu0 %v4492_v13 }
  0x98   :  { %2534 = vmatprep.subr.bf16.mxu0 %v3278_v63  ;;  %v976_v63 = vrot.slane %v968_v43, %v961_v7 }
  0x9a   :  { %vm3404_vm7 = vcmp.eq.s32.totalorder %v976_v63, 1 }
  0x9b   :  { %2536 = vmatpush1.bf16.msra.mxu0 %v3284_v6  ;;  %v962_v6 = vrot.slane %v94_v11, %v961_v7 }
  0x9c   :  { %2538 = vmatprep.subr.bf16.mxu0 %v3288_v20 }
  0x9f   :  { %2540 = vmatpush1.bf16.msra.mxu0 %v3290_v22 }
  0xa0   :  { %2542 = vmatprep.subr.bf16.mxu0 %v3292_v46 }
  0xa3   :  { %2544 = vmatpush1.bf16.msra.mxu0 %v3294_v12  ;;  %v1014_v12 = vrot.slane %v1006_v49, %v961_v7 }
  0xa4   :  { %2546 = vmatprep.subr.bf16.mxu0 %v4473_v17 }
  0xa5   :  { %vm3400_vm6 = vcmp.eq.s32.totalorder %v1014_v12, 1 }
  0xa6   :  { %842 = vmatmul.mubr.f32.vlgmr.msra.gmra.mrb[0].mxu0 %v3051_v48 }
  0xa7   :  { %2548 = vmatpush1.bf16.msra.mxu0 %v4475_v19  ;;  %944 = vmatprep.mubr.f32.mxu0 %v4469_v39 }
  0xa8   :  { %2550 = vmatprep.subr.bf16.mxu0 %v4476_v23 }
  0xab   :  { %2552 = vmatpush1.bf16.msra.mxu0 %v4477_v27 }
  0xac   :  { %2554 = vmatprep.subr.bf16.mxu0 %v4478_v29 }
  0xaf   :  { %2556 = vmatpush1.bf16.msra.mxu0 %v4479_v30  ;;  %v96_v30 = vld [vmem:[%s4277_s6] sm:$0x3] }
  0xb0   :  { %2558 = vmatprep.subr.bf16.mxu0 %v4480_v33 }
  0xb3   :  { %2560 = vmatpush1.bf16.msra.mxu0 %v4481_v34 }
  0xb4   :  { %2562 = vmatprep.subr.bf16.mxu0 %v4482_v44 }
  0xb7   :  { %2564 = vmatpush1.bf16.msra.mxu0 %v4483_v62  ;;  %v3447_v62 = vrot.slane %v96_v30, %v957_v31 }
  0xb8   :  { %2566 = vmatprep.subr.bf16.mxu0 %v4484_v24  ;;  %v3449_v24 = vrot.slane %v96_v30, %v961_v7  ;;  %v2007_v30 = vld [vmem:[%s4278_s4 + $0x20] sm:$0xff] }
  0xb9   :  { %4509 = vst [vmem:[#allocation15_spill] sm:$0xff] %v3447_v62 }
  0xba   :  { %4510 = vst [vmem:[#allocation17_spill] sm:$0xff] %v3449_v24 }
  0xbb   :  { %2568 = vmatpush1.bf16.msra.mxu0 %v4485_v35 }
  0xbc   :  { %2570 = vmatprep.subr.bf16.mxu0 %v4486_v3 }
  0xbf   :  { %2572 = vmatpush1.bf16.msra.mxu0 %v4487_v8 }
  0xc0   :  { %2574 = vmatprep.subr.bf16.mxu0 %v4488_v47  ;;  %v4543_v57 = vld [vmem:[#allocation15_spill] sm:$0xff] }
  0xc3   :  { %2576 = vmatpush1.bf16.msra.mxu0 %v4489_v54 }
  0xc6   :  { %946 = vmatmul.mubr.f32.vlgmr.msra.gmra.mrb[0].mxu0 %v3051_v48  ;;  %v1025_v48 = vsel %vm1024_vm2, 1, %v2818_v9 }
  0xc7   :  { %v1029_v16 = vrot.slane %v1025_v48, %v957_v31  ;;  %v1033_v20 = vrot.slane %v1025_v48, %v961_v7 }
  0xc9   :  { %vm3408_vm8 = vcmp.eq.s32.totalorder %v1029_v16, 1  ;;  %vm3412_vm9 = vcmp.eq.s32.totalorder %v1033_v20, 1 }
 0x199   :  { %v947_v5 = vpop.f32.mrb[0].mxu0 }
 0x19a   :  { %v952_v22 = vmul.f32 2.0, %v947_v5  ;;  %v949_v46 = vpop.f32.mrb[1].mxu0 }
 0x19b   :  { %v953_v10 = vmul.f32 2.0, %v949_v46  ;;  %v2019_v46 = vld [vmem:[%s4278_s4 + $0x80] sm:$0xff] }
 0x19c   :  { %v965_v55 = vsub.f32 %v958_v2, %v952_v22 }
 0x19d   :  { %v966_v38 = vsub.f32 %v962_v6, %v953_v10  ;;  %v2769_v10 = vpack.c.bf16 %v2020_v4, %v2019_v46 }
 0x19e   :  { %v1017_v50 = vsel %vm3392_vm4, %v965_v55, inf  ;;  %v979_v51 = vsel %vm3396_vm5, %v965_v55, inf  ;;  %v1036_v1 = vsel %vm3408_vm8, %v965_v55, inf  ;;  %v998_v17 = vsel %vm3420_vm10, %v965_v55, inf }
 0x19f   :  { %v1018_v58 = vsel %vm3400_vm6, %v966_v38, inf  ;;  %v980_v59 = vsel %vm3404_vm7, %v966_v38, inf  ;;  %v1037_v15 = vsel %vm3412_vm9, %v966_v38, inf  ;;  %v999_v18 = vsel %vm3424_vm11, %v966_v38, inf  ;;  %2770 = vmatprep.subr.bf16.mxu0 %v2769_v10  ;;  %v83_v10 = vld [vmem:[%s4279_s2 + $0xa8] sm:$0xff] }
 0x1a0   :  { %v1019_v60 = vmin.f32 %v1017_v50, %v1018_v58  ;;  %v981_v0 = vmin.f32 %v979_v51, %v980_v59  ;;  %v1038_v19 = vmin.f32 %v1036_v1, %v1037_v15  ;;  %v1000_v23 = vmin.f32 %v998_v17, %v999_v18  ;;  %v2022_v50 = vld [vmem:[%s4278_s4 + $0x98] sm:$0xff]  ;;  %v2005_v59 = vld [vmem:[%s4278_s4 + $0x10] sm:$0xff]  ;;  %v79_v1 = vld [vmem:[%s4279_s2 + $0x88] sm:$0xff] }
 0x1a1   :  { %v2023_v17 = vld [vmem:[%s4278_s4 + $0xa0] sm:$0xff]  ;;  %v2024_v18 = vld [vmem:[%s4278_s4 + $0xa8] sm:$0xff] }
 0x1a2   :  { %1020 = vmin.xlane.f32.xlu1 %v1019_v60  ;;  %982 = vmin.xlane.f32.xlu0 %v981_v0  ;;  %v2006_v60 = vld [vmem:[%s4278_s4 + $0x18] sm:$0xff]  ;;  %v78_v0 = vld [vmem:[%s4279_s2 + $0x80] sm:$0xff] }
 0x1a3   :  { %v1190_v15 = vand.u32 4294901760, %v78_v0 }
 0x1a6   :  { %1039 = vmin.xlane.f32.xlu1 %v1038_v19  ;;  %1001 = vmin.xlane.f32.xlu0 %v1000_v23  ;;  %v2775_v19 = vpack.c.bf16 %v2006_v60, %v2005_v59  ;;  %v1193_v23 = vand.u32 4294901760, %v79_v1  ;;  %v2028_v59 = vld [vmem:[%s4278_s4 + $0xc8] sm:$0xff]  ;;  %v66_v60 = vld [vmem:[%s4279_s2 + $0x20] sm:$0xff] }
 0x22f   :  { %v1021_v27 = vpop.xlane.xlu1 %1020  ;;  %v983_v29 = vpop.xlane.xlu0 %982 }
 0x230   :  { %v984_v33 = vsel %vm3396_vm5, %v983_v29, %v965_v55  ;;  %v985_v34 = vsel %vm3404_vm7, %v983_v29, %v966_v38  ;;  %v63_v29 = vld [vmem:[%s4279_s2 + $0x8] sm:$0xff] }
 0x233   :  { %v1002_v44 = vpop.xlane.xlu0 %1001  ;;  %v1040_v8 = vpop.xlane.xlu1 %1039 }
 0x234   :  { %v1003_v35 = vsel %vm3420_vm10, %v1002_v44, %v984_v33  ;;  %v1004_v3 = vsel %vm3424_vm11, %v1002_v44, %v985_v34  ;;  %v3562_v33 = vsub.f32 %v78_v0, %v1190_v15  ;;  %v2777_v34 = vpack.c.bf16 %v2024_v18, %v2023_v17  ;;  %v67_v0 = vld [vmem:[%s4279_s2 + $0x28] sm:$0xff] }
 0x235   :  { %v1022_v47 = vsel %vm3392_vm4, %v1021_v27, %v1003_v35  ;;  %v1023_v54 = vsel %vm3400_vm6, %v1021_v27, %v1004_v3  ;;  %v62_v27 = vld [vmem:[%s4279_s2] sm:$0xff]  ;;  %v1145_v35 = vand.u32 4294901760, %v63_v29  ;;  %v2008_v3 = vld [vmem:[%s4278_s4 + $0x28] sm:$0xff]  ;;  %v1205_v18 = vand.u32 4294901760, %v83_v10 }
 0x236   :  { %v1041_v26 = vsel %vm3408_vm8, %v1040_v8, %v1022_v47  ;;  %v1042_v32 = vsel %vm3412_vm9, %v1040_v8, %v1023_v54  ;;  %v1142_v44 = vand.u32 4294901760, %v62_v27  ;;  %v80_v8 = vld [vmem:[%s4279_s2 + $0x90] sm:$0xff]  ;;  %v81_v47 = vld [vmem:[%s4279_s2 + $0x98] sm:$0xff]  ;;  %v3573_v54 = vpack.c.bf16 %v1193_v23, %v1190_v15 }
 0x237   :  { %vm1043_vm12 = vcmp.le.f32.partialorder %v965_v55, %v1041_v26  ;;  %vm1044_vm13 = vcmp.le.f32.partialorder %v966_v38, %v1042_v32  ;;  %v2004_v55 = vld [vmem:[%s4278_s4 + $0x8] sm:$0xff]  ;;  %v2021_v38 = vld [vmem:[%s4278_s4 + $0x90] sm:$0xff]  ;;  %v3575_v26 = vsub.f32 %v79_v1, %v1193_v23  ;;  %v1196_v32 = vand.u32 4294901760, %v80_v8 }
 0x238   :  { %v3464_v13 = vsel %vm1043_vm12, %v3447_v62, 64  ;;  %v3467_v25 = vsel %vm1044_vm13, %v3449_v24, 64  ;;  %v2771_v51 = vpack.c.bf16 %v2004_v55, %v2003_v42  ;;  %v2773_v58 = vpack.c.bf16 %v2022_v50, %v2021_v38  ;;  %4511 = vst [vmem:[#allocation18_spill] sm:$0xff] %v3573_v54  ;;  %2578 = vmatprep.subr.bf16.mxu1 %v3573_v54  ;;  %v82_v42 = vld [vmem:[%s4279_s2 + $0xa0] sm:$0xff] }
 0x239   :  { %v1075_v21 = vsel %vm3420_vm10, %v3464_v13, 64  ;;  %v1076_v45 = vsel %vm3424_vm11, %v3467_v25, 64  ;;  %v1055_v31 = vsel %vm3396_vm5, %v3464_v13, 64  ;;  %v1056_v7 = vsel %vm3404_vm7, %v3467_v25, 64  ;;  %v2027_v55 = vld [vmem:[%s4278_s4 + $0xc0] sm:$0xff] }
 0x23a   :  { %vm1077_vm14 = vcmp.lt.s32.totalorder %v1075_v21, %v1076_v45  ;;  %vm1057_vm15 = vcmp.lt.s32.totalorder %v1055_v31, %v1056_v7  ;;  %v1115_v9 = vsel %vm3408_vm8, %v3464_v13, 64  ;;  %v1116_v49 = vsel %vm3412_vm9, %v3467_v25, 64  ;;  %2772 = vmatpush3.bf16.msra.mxu0 %v2771_v51 }
 0x23b   :  { %v3487_v43 = vsel %vm1077_vm14, %v1075_v21, %v1076_v45  ;;  %v3489_v11 = vsel %vm1057_vm15, %v1055_v31, %v1056_v7  ;;  %vm1117_vm0 = vcmp.lt.s32.totalorder %v1115_v9, %v1116_v49  ;;  %v1095_v48 = vsel %vm3392_vm4, %v3464_v13, 64  ;;  %2774 = vmatprep.subr.bf16.mxu0 %v2773_v58  ;;  %v2025_v21 = vld [vmem:[%s4278_s4 + $0xb0] sm:$0xff]  ;;  %v2026_v45 = vld [vmem:[%s4278_s4 + $0xb8] sm:$0xff] }
 0x23c   :  { %v1080_v14 = vshra.s32 %v3487_v43, 16  ;;  %v1060_v56 = vshra.s32 %v3489_v11, 16  ;;  %v3496_v53 = vsel %vm1117_vm0, %v1115_v9, %v1116_v49  ;;  %v1096_v2 = vsel %vm3400_vm6, %v3467_v25, 64  ;;  %v64_v31 = vld [vmem:[%s4279_s2 + $0x10] sm:$0xff] }
 0x23d   :  { %vm1097_vm1 = vcmp.lt.s32.totalorder %v1095_v48, %v1096_v2  ;;  %v1120_v5 = vshra.s32 %v3496_v53, 16  ;;  %v3586_v7 = vpack.c.bf16 %v1145_v35, %v1142_v44  ;;  %v3588_v9 = vsub.f32 %v62_v27, %v1142_v44 }
 0x23e   :  { %v3501_v12 = vcvt.s32.f32 %v1080_v14  ;;  %v3503_v63 = vcvt.s32.f32 %v1060_v56  ;;  %v3506_v6 = vsel %vm1097_vm1, %v1095_v48, %v1096_v2  ;;  %v3590_v49 = vsub.f32 %v63_v29, %v1145_v35  ;;  %v65_v14 = vld [vmem:[%s4279_s2 + $0x18] sm:$0xff]  ;;  %v2009_v56 = vld [vmem:[%s4278_s4 + $0x30] sm:$0xff]  ;;  %2776 = vmatpush3.bf16.msra.mxu0 %v2775_v19 }
 0x23f   :  { %v1100_v16 = vshra.s32 %v3506_v6, 16  ;;  %v3511_v20 = vcvt.s32.f32 %v1120_v5  ;;  %4512 = vst [vmem:[#allocation2_spill] sm:$0xff] %v3586_v7  ;;  %v1199_v48 = vand.u32 4294901760, %v81_v47  ;;  %v2010_v2 = vld [vmem:[%s4278_s4 + $0x38] sm:$0xff]  ;;  %v2779_v5 = vpack.c.bf16 %v2008_v3, %v2007_v30  ;;  %2778 = vmatprep.subr.bf16.mxu0 %v2777_v34  ;;  %2580 = vmatpush3.bf16.msra.mxu1 %v3586_v7 }
 0x240   :  { %1083 = vmin.xlane.f32.xlu1 %v3501_v12  ;;  %1063 = vmin.xlane.f32.xlu0 %v3503_v63  ;;  %v1148_v46 = vand.u32 4294901760, %v64_v31  ;;  %v1151_v4 = vand.u32 4294901760, %v65_v14  ;;  %v2781_v51 = vpack.c.bf16 %v2026_v45, %v2025_v21  ;;  %v1202_v58 = vand.u32 4294901760, %v82_v42 }
 0x241   :  { %v3513_v22 = vcvt.s32.f32 %v1100_v16  ;;  %v3602_v16 = vsub.f32 %v80_v8, %v1196_v32  ;;  %v3614_v38 = vpack.c.bf16 %v1199_v48, %v1196_v32  ;;  %v3616_v50 = vsub.f32 %v81_v47, %v1199_v48  ;;  %v2011_v47 = vld [vmem:[%s4278_s4 + $0x40] sm:$0xff]  ;;  %v2012_v32 = vld [vmem:[%s4278_s4 + $0x48] sm:$0xff] }
 0x242   :  { %v3627_v1 = vpack.c.bf16 %v1151_v4, %v1148_v46  ;;  %v3629_v15 = vsub.f32 %v64_v31, %v1148_v46  ;;  %v3631_v17 = vsub.f32 %v65_v14, %v1151_v4  ;;  %v3634_v19 = vsub.f32 %v82_v42, %v1202_v58  ;;  %2780 = vmatpush3.bf16.msra.mxu0 %v2779_v5 }
 0x243   :  { %4513 = vst [vmem:[#allocation19_spill] sm:$0xff] %v3614_v38  ;;  %2582 = vmatprep.subr.bf16.mxu1 %v3614_v38  ;;  %v1154_v23 = vand.u32 4294901760, %v66_v60  ;;  %v1157_v27 = vand.u32 4294901760, %v67_v0  ;;  %v2783_v29 = vpack.c.bf16 %v2010_v2, %v2009_v56  ;;  %v3636_v30 = vpack.c.bf16 %v1205_v18, %v1202_v58  ;;  %2782 = vmatprep.subr.bf16.mxu0 %v2781_v51 }
 0x244   :  { %1123 = vmin.xlane.f32.xlu1 %v3511_v20  ;;  %1103 = vmin.xlane.f32.xlu0 %v3513_v22  ;;  %4514 = vst [vmem:[#allocation3_spill] sm:$0xff] %v3627_v1  ;;  %v3638_v34 = vsub.f32 %v83_v10, %v1205_v18  ;;  %v2785_v44 = vpack.c.bf16 %v2028_v59, %v2027_v55  ;;  %v1079_v45 = vand.u32 65535, %v3487_v43  ;;  %v1059_v31 = vand.u32 65535, %v3489_v11  ;;  %v2029_v59 = vld [vmem:[%s4278_s4 + $0xd0] sm:$0xff] }
 0x245   :  { %4515 = vst [vmem:[#allocation4_spill] sm:$0xff] %v3636_v30  ;;  %2584 = vmatpush3.bf16.msra.mxu1 %v3627_v1  ;;  %v3641_v35 = vpack.c.bf16 %v1157_v27, %v1154_v23  ;;  %v3643_v3 = vsub.f32 %v66_v60, %v1154_v23  ;;  %v3645_v8 = vsub.f32 %v67_v0, %v1157_v27  ;;  %v1119_v5 = vand.u32 65535, %v3496_v53  ;;  %v2030_v60 = vld [vmem:[%s4278_s4 + $0xd8] sm:$0xff] }
 0x246   :  { %2586 = vmatprep.subr.bf16.mxu1 %v3636_v30  ;;  %2784 = vmatpush3.bf16.msra.mxu0 %v2783_v29  ;;  %v2787_v21 = vpack.c.bf16 %v2012_v32, %v2011_v47  ;;  %v1081_v56 = vcvt.s32.f32 %v1079_v45  ;;  %v1061_v2 = vcvt.s32.f32 %v1059_v31  ;;  %v1099_v46 = vand.u32 65535, %v3506_v6  ;;  %v85_v6 = vld [vmem:[%s4279_s2 + $0xb8] sm:$0xff]  ;;  %v2013_v29 = vld [vmem:[%s4278_s4 + $0x50] sm:$0xff]  ;;  %v87_v45 = vld [vmem:[%s4279_s2 + $0xc8] sm:$0xff] }
 0x247   :  { %4516 = vst [vmem:[#allocation5_spill] sm:$0xff] %v3641_v35  ;;  %2786 = vmatprep.subr.bf16.mxu0 %v2785_v44  ;;  %v1121_v10 = vcvt.s32.f32 %v1119_v5  ;;  %v1211_v58 = vand.u32 4294901760, %v85_v6  ;;  %v2789_v27 = vpack.c.bf16 %v2030_v60, %v2029_v59  ;;  %v2014_v44 = vld [vmem:[%s4278_s4 + $0x58] sm:$0xff]  ;;  %v88_v60 = vld [vmem:[%s4279_s2 + $0xd0] sm:$0xff] }
 0x248   :  { %v1101_v55 = vcvt.s32.f32 %v1099_v46  ;;  %v2791_v32 = vpack.c.bf16 %v2014_v44, %v2013_v29  ;;  %v70_v46 = vld [vmem:[%s4279_s2 + $0x40] sm:$0xff] }
 0x249   :  { %2588 = vmatpush3.bf16.msra.mxu1 %v3641_v35 }
 0x24a   :  { %2788 = vmatpush3.bf16.msra.mxu0 %v2787_v21  ;;  %v86_v21 = vld [vmem:[%s4279_s2 + $0xc0] sm:$0xff] }
 0x24b   :  { %2790 = vmatprep.subr.bf16.mxu0 %v2789_v27  ;;  %v1214_v5 = vand.u32 4294901760, %v86_v21 }
 0x24e   :  { %2792 = vmatpush3.bf16.msra.mxu0 %v2791_v32  ;;  %v2033_v32 = vld [vmem:[%s4278_s4 + $0xf0] sm:$0xff] }
 0x2cd   :  { %v3657_v48 = vpop.xlane.xlu1 %1083  ;;  %v3659_v14 = vpop.xlane.xlu0 %1063 }
 0x2ce   :  { %vm1085_vm2 = vcmp.eq.f32.partialorder %v3501_v12, %v3657_v48  ;;  %vm1065_vm3 = vcmp.eq.f32.partialorder %v3503_v63, %v3659_v14  ;;  %v84_v63 = vld [vmem:[%s4279_s2 + $0xb0] sm:$0xff] }
 0x2cf   :  { %v1086_v4 = vsel %vm1085_vm2, %v1081_v56, inf  ;;  %v1066_v43 = vsel %vm1065_vm3, %v1061_v2, inf  ;;  %v1208_v51 = vand.u32 4294901760, %v84_v63  ;;  %v3712_v56 = vsub.f32 %v85_v6, %v1211_v58 }
 0x2d0   :  { %1087 = vmin.xlane.f32.xlu1 %v1086_v4  ;;  %1067 = vmin.xlane.f32.xlu0 %v1066_v43  ;;  %v71_v4 = vld [vmem:[%s4279_s2 + $0x48] sm:$0xff] }
 0x2d1   :  { %v3667_v11 = vpop.xlane.xlu1 %1123  ;;  %v3669_v42 = vpop.xlane.xlu0 %1103  ;;  %v3693_v23 = vpack.c.bf16 %v1211_v58, %v1208_v51  ;;  %v3710_v31 = vsub.f32 %v84_v63, %v1208_v51  ;;  %v1169_v63 = vand.u32 4294901760, %v71_v4  ;;  %v2015_v51 = vld [vmem:[%s4278_s4 + $0x60] sm:$0xff]  ;;  %v2016_v58 = vld [vmem:[%s4278_s4 + $0x68] sm:$0xff] }
 0x2d2   :  { %vm1125_vm12 = vcmp.eq.f32.partialorder %v3511_v20, %v3667_v11  ;;  %vm1105_vm13 = vcmp.eq.f32.partialorder %v3513_v22, %v3669_v42  ;;  %v68_v20 = vld [vmem:[%s4279_s2 + $0x30] sm:$0xff]  ;;  %v69_v22 = vld [vmem:[%s4279_s2 + $0x38] sm:$0xff]  ;;  %v2795_v59 = vpack.c.bf16 %v2016_v58, %v2015_v51 }
 0x2d3   :  { %v1126_v53 = vsel %vm1125_vm12, %v1121_v10, inf  ;;  %v1106_v12 = vsel %vm1105_vm13, %v1101_v55, inf  ;;  %v1160_v0 = vand.u32 4294901760, %v68_v20  ;;  %v1163_v18 = vand.u32 4294901760, %v69_v22  ;;  %4517 = vst [vmem:[#allocation6_spill] sm:$0xff] %v3693_v23  ;;  %2590 = vmatprep.subr.bf16.mxu1 %v3693_v23  ;;  %v2031_v55 = vld [vmem:[%s4278_s4 + $0xe0] sm:$0xff] }
 0x2d4   :  { %1127 = vmin.xlane.f32.xlu1 %v1126_v53  ;;  %1107 = vmin.xlane.f32.xlu0 %v1106_v12  ;;  %v1217_v10 = vand.u32 4294901760, %v87_v45  ;;  %v2032_v53 = vld [vmem:[%s4278_s4 + $0xe8] sm:$0xff]  ;;  %v1166_v12 = vand.u32 4294901760, %v70_v46  ;;  %v3753_v44 = vsub.f32 %v71_v4, %v1169_v63  ;;  %v73_v4 = vld [vmem:[%s4279_s2 + $0x58] sm:$0xff] }
 0x2d5   :  { %v3701_v47 = vpack.c.bf16 %v1163_v18, %v1160_v0  ;;  %v3714_v2 = vsub.f32 %v68_v20, %v1160_v0  ;;  %v3723_v43 = vsub.f32 %v69_v22, %v1163_v18  ;;  %v2793_v6 = vpack.c.bf16 %v2032_v53, %v2031_v55  ;;  %v89_v0 = vld [vmem:[%s4279_s2 + $0xd8] sm:$0xff]  ;;  %v2017_v53 = vld [vmem:[%s4278_s4 + $0x70] sm:$0xff] }
 0x2d6   :  { %v3737_v20 = vpack.c.bf16 %v1217_v10, %v1214_v5  ;;  %v3739_v22 = vpack.c.bf16 %v1169_v63, %v1166_v12  ;;  %v3747_v18 = vsub.f32 %v86_v21, %v1214_v5  ;;  %v3749_v27 = vsub.f32 %v87_v45, %v1217_v10  ;;  %v2034_v55 = vld [vmem:[%s4278_s4 + $0xf8] sm:$0xff]  ;;  %v72_v21 = vld [vmem:[%s4279_s2 + $0x50] sm:$0xff] }
 0x2d7   :  { %4518 = vst [vmem:[#allocation7_spill] sm:$0xff] %v3701_v47  ;;  %2592 = vmatpush3.bf16.msra.mxu1 %v3701_v47  ;;  %2794 = vmatprep.subr.bf16.mxu0 %v2793_v6  ;;  %v3751_v29 = vsub.f32 %v70_v46, %v1166_v12  ;;  %v1220_v45 = vand.u32 4294901760, %v88_v60  ;;  %v1223_v5 = vand.u32 4294901760, %v89_v0  ;;  %v2797_v46 = vpack.c.bf16 %v2034_v55, %v2033_v32  ;;  %v2018_v12 = vld [vmem:[%s4278_s4 + $0x78] sm:$0xff]  ;;  %v90_v55 = vld [vmem:[%s4279_s2 + $0xe0] sm:$0xff] }
 0x2d8   :  { %4519 = vst [vmem:[#allocation8_spill] sm:$0xff] %v3737_v20  ;;  %4520 = vst [vmem:[#allocation9_spill] sm:$0xff] %v3739_v22  ;;  %2594 = vmatprep.subr.bf16.mxu1 %v3737_v20  ;;  %2796 = vmatpush3.bf16.msra.mxu0 %v2795_v59  ;;  %v1172_v10 = vand.u32 4294901760, %v72_v21  ;;  %v1175_v63 = vand.u32 4294901760, %v73_v4  ;;  %v2799_v6 = vpack.c.bf16 %v2018_v12, %v2017_v53  ;;  %v91_v20 = vld [vmem:[%s4279_s2 + $0xe8] sm:$0xff]  ;;  %v1226_v12 = vand.u32 4294901760, %v90_v55 }
 0x2d9   :  { %v3775_v51 = vpack.c.bf16 %v1223_v5, %v1220_v45  ;;  %v3777_v58 = vsub.f32 %v88_v60, %v1220_v45  ;;  %v3779_v59 = vsub.f32 %v89_v0, %v1223_v5  ;;  %2798 = vmatprep.subr.bf16.mxu0 %v2797_v46  ;;  %v1229_v60 = vand.u32 4294901760, %v91_v20  ;;  %v74_v0 = vld [vmem:[%s4279_s2 + $0x60] sm:$0xff]  ;;  %v92_v45 = vld [vmem:[%s4279_s2 + $0xf0] sm:$0xff]  ;;  %v77_v47 = vld [vmem:[%s4279_s2 + $0x78] sm:$0xff] }
 0x2da   :  { %v3781_v32 = vsub.f32 %v72_v21, %v1172_v10  ;;  %v3791_v53 = vsub.f32 %v73_v4, %v1175_v63  ;;  %v75_v21 = vld [vmem:[%s4279_s2 + $0x68] sm:$0xff]  ;;  %v1178_v5 = vand.u32 4294901760, %v74_v0  ;;  %v93_v4 = vld [vmem:[%s4279_s2 + $0xf8] sm:$0xff] }
 0x2db   :  { %2596 = vmatpush3.bf16.msra.mxu1 %v3739_v22  ;;  %4521 = vst [vmem:[#allocation10_spill] sm:$0xff] %v3775_v51  ;;  %v3789_v22 = vpack.c.bf16 %v1175_v63, %v1172_v10  ;;  %v1181_v46 = vand.u32 4294901760, %v75_v21  ;;  %v1232_v10 = vand.u32 4294901760, %v92_v45  ;;  %v76_v63 = vld [vmem:[%s4279_s2 + $0x70] sm:$0xff]  ;;  %v3813_v23 = vpack.c.bf16 %v1229_v60, %v1226_v12 }
 0x2dc   :  { %2598 = vmatprep.subr.bf16.mxu1 %v3775_v51  ;;  %2800 = vmatpush3.bf16.msra.mxu0 %v2799_v6  ;;  %v3815_v6 = vsub.f32 %v90_v55, %v1226_v12  ;;  %v3817_v51 = vsub.f32 %v91_v20, %v1229_v60  ;;  %v1235_v35 = vand.u32 4294901760, %v93_v4  ;;  %v3821_v1 = vsub.f32 %v74_v0, %v1178_v5 }
 0x2dd   :  { %4522 = vst [vmem:[#allocation11_spill] sm:$0xff] %v3789_v22  ;;  %4523 = vst [vmem:[#allocation12_spill] sm:$0xff] %v3813_v23  ;;  %v3819_v30 = vpack.c.bf16 %v1181_v46, %v1178_v5  ;;  %v3823_v38 = vsub.f32 %v75_v21, %v1181_v46  ;;  %v3825_v7 = vsub.f32 %v92_v45, %v1232_v10  ;;  %v1184_v39 = vand.u32 4294901760, %v76_v63 }
 0x2de   :  { %v3828_v54 = vpack.c.bf16 %v1235_v35, %v1232_v10  ;;  %v1187_v55 = vand.u32 4294901760, %v77_v47  ;;  %v4370_v20 = vand.u32 4294901760, %v3562_v33  ;;  %v4371_v12 = vand.u32 4294901760, %v3575_v26 }
 0x2df   :  { %2600 = vmatpush3.bf16.msra.mxu1 %v3789_v22  ;;  %4524 = vst [vmem:[#allocation13_spill] sm:$0xff] %v3819_v30  ;;  %4525 = vst [vmem:[#allocation14_spill] sm:$0xff] %v3825_v7  ;;  %v3830_v22 = vsub.f32 %v93_v4, %v1235_v35  ;;  %v4372_v60 = vand.u32 4294901760, %v3588_v9  ;;  %v4373_v0 = vand.u32 4294901760, %v3590_v49  ;;  %v3839_v45 = vsub.f32 %v76_v63, %v1184_v39 }
 0x2e0   :  { %2602 = vmatprep.subr.bf16.mxu1 %v3813_v23  ;;  %4526 = vst [vmem:[#allocation16_spill] sm:$0xff] %v3828_v54  ;;  %v3837_v21 = vpack.c.bf16 %v1187_v55, %v1184_v39  ;;  %v3841_v5 = vsub.f32 %v77_v47, %v1187_v55  ;;  %v1369_v35 = vsub.f32 %v3562_v33, %v4370_v20  ;;  %v4380_v47 = vand.u32 4294901760, %v3602_v16 }
 0x2e1   :  { %4527 = vst [vmem:[#allocation20_spill] sm:$0xff] %v3830_v22  ;;  %v1376_v46 = vsub.f32 %v3575_v26, %v4371_v12  ;;  %v1257_v4 = vsub.f32 %v3588_v9, %v4372_v60  ;;  %v1264_v39 = vsub.f32 %v3590_v49, %v4373_v0  ;;  %v4379_v10 = vand.u32 4294901760, %v3616_v50 }
 0x2e2   :  { %4528 = vst [vmem:[#allocation21_spill] sm:$0xff] %v3837_v21  ;;  %v1370_v63 = vand.u32 4294901760, %v1369_v35  ;;  %v1383_v12 = vsub.f32 %v3602_v16, %v4380_v47  ;;  %v4385_v0 = vand.u32 4294901760, %v3629_v15  ;;  %v4386_v47 = vand.u32 4294901760, %v3638_v34 }
 0x2e3   :  { %2604 = vmatpush3.bf16.msra.mxu1 %v3819_v30  ;;  %v1377_v55 = vand.u32 4294901760, %v1376_v46  ;;  %v1265_v20 = vand.u32 4294901760, %v1264_v39  ;;  %v1390_v60 = vsub.f32 %v3616_v50, %v4379_v10  ;;  %v4383_v30 = vand.u32 4294901760, %v3631_v17 }
 0x2e4   :  { %2606 = vmatprep.subr.bf16.mxu1 %v3828_v54  ;;  %v1258_v54 = vand.u32 4294901760, %v1257_v4  ;;  %v1384_v35 = vand.u32 4294901760, %v1383_v12  ;;  %v1271_v4 = vsub.f32 %v3629_v15, %v4385_v0  ;;  %v4384_v10 = vand.u32 4294901760, %v3634_v19 }
 0x2e5   :  { %v2609_v23 = vpack.c.bf16 %v1377_v55, %v1370_v63  ;;  %v1391_v46 = vand.u32 4294901760, %v1390_v60  ;;  %v1278_v39 = vsub.f32 %v3631_v17, %v4383_v30 }
 0x2e6   :  { %v3867_v62 = vpack.c.bf16 %v1265_v20, %v1258_v54  ;;  %v4388_v54 = vand.u32 4294901760, %v3645_v8  ;;  %v1272_v12 = vand.u32 4294901760, %v1271_v4  ;;  %v1397_v63 = vsub.f32 %v3634_v19, %v4384_v10 }
 0x2e7   :  { %2608 = vmatpush3.bf16.msra.mxu1 %v3837_v21  ;;  %v4387_v21 = vand.u32 4294901760, %v3643_v3  ;;  %v3879_v20 = vpack.c.bf16 %v1391_v46, %v1384_v35  ;;  %v1279_v60 = vand.u32 4294901760, %v1278_v39  ;;  %v4390_v46 = vand.u32 4294901760, %v3710_v31 }
 0x2e8   :  { %4529 = vst [vmem:[#allocation22_spill] sm:$0xff] %v3867_v62  ;;  %2610 = vmatprep.subr.bf16.mxu1 %v2609_v23  ;;  %v1404_v23 = vsub.f32 %v3638_v34, %v4386_v47  ;;  %v1292_v30 = vsub.f32 %v3645_v8, %v4388_v54  ;;  %v4389_v4 = vand.u32 4294901760, %v3712_v56  ;;  %v1398_v39 = vand.u32 4294901760, %v1397_v63 }
 0x2e9   :  { %4530 = vst [vmem:[#allocation23_spill] sm:$0xff] %v3879_v20  ;;  %v1285_v55 = vsub.f32 %v3643_v3, %v4387_v21  ;;  %v3893_v35 = vpack.c.bf16 %v1279_v60, %v1272_v12  ;;  %v1411_v47 = vsub.f32 %v3710_v31, %v4390_v46  ;;  %v4392_v54 = vand.u32 4294901760, %v3714_v2 }
 0x2ea   :  { %v1405_v10 = vand.u32 4294901760, %v1404_v23  ;;  %v1293_v20 = vand.u32 4294901760, %v1292_v30  ;;  %v1418_v21 = vsub.f32 %v3712_v56, %v4389_v4  ;;  %v4391_v12 = vand.u32 4294901760, %v3723_v43 }
 0x2eb   :  { %4531 = vst [vmem:[#allocation24_spill] sm:$0xff] %v3893_v35  ;;  %v1286_v0 = vand.u32 4294901760, %v1285_v55  ;;  %v1412_v63 = vand.u32 4294901760, %v1411_v47  ;;  %v1299_v30 = vsub.f32 %v3714_v2, %v4392_v54  ;;  %v4393_v4 = vand.u32 4294901760, %v3747_v18 }
 0x2ec   :  { %v3905_v60 = vpack.c.bf16 %v1405_v10, %v1398_v39  ;;  %v1419_v23 = vand.u32 4294901760, %v1418_v21  ;;  %v1306_v55 = vsub.f32 %v3723_v43, %v4391_v12  ;;  %v4394_v46 = vand.u32 4294901760, %v3749_v27 }
 0x2ed   :  { %v3907_v35 = vpack.c.bf16 %v1293_v20, %v1286_v0  ;;  %v4395_v62 = vand.u32 4294901760, %v3751_v29  ;;  %v4396_v10 = vand.u32 4294901760, %v3753_v44  ;;  %v1300_v47 = vand.u32 4294901760, %v1299_v30 }
 0x2ee   :  { %4532 = vst [vmem:[#allocation25_spill] sm:$0xff] %v3905_v60  ;;  %v3919_v0 = vpack.c.bf16 %v1419_v23, %v1412_v63  ;;  %v1307_v21 = vand.u32 4294901760, %v1306_v55  ;;  %v1425_v20 = vsub.f32 %v3747_v18, %v4393_v4  ;;  %v1432_v39 = vsub.f32 %v3749_v27, %v4394_v46 }
 0x2ef   :  { %4533 = vst [vmem:[#allocation26_spill] sm:$0xff] %v3907_v35  ;;  %v1313_v12 = vsub.f32 %v3751_v29, %v4395_v62  ;;  %v1320_v54 = vsub.f32 %v3753_v44, %v4396_v10  ;;  %v4398_v23 = vand.u32 4294901760, %v3777_v58  ;;  %v4397_v30 = vand.u32 4294901760, %v3779_v59 }
 0x2f0   :  { %4534 = vst [vmem:[#allocation27_spill] sm:$0xff] %v3919_v0  ;;  %v3933_v63 = vpack.c.bf16 %v1307_v21, %v1300_v47  ;;  %v1426_v55 = vand.u32 4294901760, %v1425_v20  ;;  %v1433_v4 = vand.u32 4294901760, %v1432_v39  ;;  %v4400_v10 = vand.u32 4294901760, %v3781_v32 }
 0x2f1   :  { %v1314_v0 = vand.u32 4294901760, %v1313_v12  ;;  %v1321_v35 = vand.u32 4294901760, %v1320_v54  ;;  %v1439_v46 = vsub.f32 %v3777_v58, %v4398_v23  ;;  %v1446_v62 = vsub.f32 %v3779_v59, %v4397_v30 }
 0x2f2   :  { %4535 = vst [vmem:[#allocation28_spill] sm:$0xff] %v3933_v63  ;;  %v4399_v47 = vand.u32 4294901760, %v3791_v53  ;;  %v3945_v21 = vpack.c.bf16 %v1433_v4, %v1426_v55  ;;  %v1327_v54 = vsub.f32 %v3781_v32, %v4400_v10  ;;  %v4401_v30 = vand.u32 4294901760, %v3815_v6 }
 0x2f3   :  { %v3947_v63 = vpack.c.bf16 %v1321_v35, %v1314_v0  ;;  %v1440_v20 = vand.u32 4294901760, %v1439_v46  ;;  %v1447_v39 = vand.u32 4294901760, %v1446_v62  ;;  %v4402_v23 = vand.u32 4294901760, %v3817_v51 }
 0x2f4   :  { %4536 = vst [vmem:[#allocation29_spill] sm:$0xff] %v3945_v21  ;;  %v1334_v12 = vsub.f32 %v3791_v53, %v4399_v47  ;;  %v4403_v60 = vand.u32 4294901760, %v3821_v1  ;;  %v4404_v4 = vand.u32 4294901760, %v3823_v38  ;;  %v1328_v46 = vand.u32 4294901760, %v1327_v54 }
 0x2f5   :  { %4537 = vst [vmem:[#allocation30_spill] sm:$0xff] %v3947_v63  ;;  %v3959_v35 = vpack.c.bf16 %v1447_v39, %v1440_v20  ;;  %v1453_v0 = vsub.f32 %v3815_v6, %v4401_v30  ;;  %v1460_v55 = vsub.f32 %v3817_v51, %v4402_v23  ;;  %v4405_v39 = vand.u32 4294901760, %v3825_v7 }
 0x2f6   :  { %v1335_v62 = vand.u32 4294901760, %v1334_v12  ;;  %v1341_v47 = vsub.f32 %v3821_v1, %v4403_v60  ;;  %v1348_v10 = vsub.f32 %v3823_v38, %v4404_v4  ;;  %v4406_v54 = vand.u32 4294901760, %v3830_v22 }
 0x2f7   :  { %4538 = vst [vmem:[#allocation31_spill] sm:$0xff] %v3959_v35  ;;  %v1454_v12 = vand.u32 4294901760, %v1453_v0  ;;  %v1461_v30 = vand.u32 4294901760, %v1460_v55  ;;  %v1467_v23 = vsub.f32 %v3825_v7, %v4405_v39  ;;  %v4409_v4 = vand.u32 4294901760, %v3839_v45 }
 0x2f8   :  { %v3973_v20 = vpack.c.bf16 %v1335_v62, %v1328_v46  ;;  %v1342_v35 = vand.u32 4294901760, %v1341_v47  ;;  %v1349_v63 = vand.u32 4294901760, %v1348_v10  ;;  %v1474_v60 = vsub.f32 %v3830_v22, %v4406_v54 }
 0x2f9   :  { %v4408_v46 = vand.u32 4294901760, %v3841_v5  ;;  %v3985_v62 = vpack.c.bf16 %v1461_v30, %v1454_v12  ;;  %v1468_v0 = vand.u32 4294901760, %v1467_v23  ;;  %v1355_v10 = vsub.f32 %v3839_v45, %v4409_v4 }
 0x2fa   :  { %4539 = vst [vmem:[#allocation32_spill] sm:$0xff] %v3973_v20  ;;  %v3987_v20 = vpack.c.bf16 %v1349_v63, %v1342_v35  ;;  %v1475_v55 = vand.u32 4294901760, %v1474_v60 }
 0x2fb   :  { %v1362_v47 = vsub.f32 %v3841_v5, %v4408_v46  ;;  %v1356_v54 = vand.u32 4294901760, %v1355_v10  ;;  %v1130_v10 = vcvt.f32.s32 %v3667_v11 }
 0x2fc   :  { %v3995_v39 = vpack.c.bf16 %v1475_v55, %v1468_v0  ;;  %v1090_v55 = vcvt.f32.s32 %v3657_v48 }
 0x2fd   :  { %v1363_v21 = vand.u32 4294901760, %v1362_v47  ;;  %v1110_v47 = vcvt.f32.s32 %v3669_v42 }
 0x2fe   :  { %v1091_v46 = vshll.u32 %v1090_v55, 16 }
 0x2ff   :  { %v3997_v24 = vpack.c.bf16 %v1363_v21, %v1356_v54  ;;  %v1070_v21 = vcvt.f32.s32 %v3659_v14  ;;  %v1131_v54 = vshll.u32 %v1130_v10, 16  ;;  %v1111_v7 = vshll.u32 %v1110_v47, 16  ;;  %v4547_v10 = vld [vmem:[#allocation22_spill] sm:$0xff]  ;;  %v4548_v47 = vld [vmem:[#allocation23_spill] sm:$0xff] }
 0x301   :  { %v1071_v30 = vshll.u32 %v1070_v21, 16 }
 0x35d   :  { %v1088_v12 = vpop.xlane.xlu1 %1087  ;;  %v1068_v35 = vpop.xlane.xlu0 %1067 }
 0x35e   :  { %v1089_v23 = vcvt.f32.s32 %v1088_v12  ;;  %v1069_v4 = vcvt.f32.s32 %v1068_v35 }
 0x360   :  { %v1092_v60 = vadd.s32 %v1091_v46, %v1089_v23  ;;  %v1072_v63 = vadd.s32 %v1071_v30, %v1069_v4 }
 0x361   :  { %v1128_v22 = vpop.xlane.xlu1 %1127  ;;  %v1108_v0 = vpop.xlane.xlu0 %1107 }
 0x362   :  { %v1073_v48 = vsel %vm3396_vm5, %v1072_v63, %v3464_v13  ;;  %v1074_v14 = vsel %vm3404_vm7, %v1072_v63, %v3467_v25  ;;  %v1129_v11 = vcvt.f32.s32 %v1128_v22  ;;  %v1109_v42 = vcvt.f32.s32 %v1108_v0  ;;  %v4540_v25 = vld [vmem:[#allocation17_spill] sm:$0xff] }
 0x363   :  { %v1093_v12 = vsel %vm3420_vm10, %v1092_v60, %v1073_v48  ;;  %v1094_v4 = vsel %vm3424_vm11, %v1092_v60, %v1074_v14  ;;  %v4549_v48 = vld [vmem:[#allocation24_spill] sm:$0xff]  ;;  %v4550_v14 = vld [vmem:[#allocation25_spill] sm:$0xff] }
 0x364   :  { %v1132_v46 = vadd.s32 %v1131_v54, %v1129_v11  ;;  %v1112_v23 = vadd.s32 %v1111_v7, %v1109_v42  ;;  %v4551_v11 = vld [vmem:[#allocation26_spill] sm:$0xff]  ;;  %v4552_v42 = vld [vmem:[#allocation27_spill] sm:$0xff] }
 0x366   :  { %v1113_v30 = vsel %vm3392_vm4, %v1112_v23, %v1093_v12  ;;  %v1114_v28 = vsel %vm3400_vm6, %v1112_v23, %v1094_v4  ;;  %v4553_v12 = vld [vmem:[#allocation28_spill] sm:$0xff]  ;;  %v4554_v4 = vld [vmem:[#allocation29_spill] sm:$0xff]  ;;  %v4556_v23 = vld [vmem:[#allocation31_spill] sm:$0xff]  ;;  %vm2107_vm4 = vcmask 31744  }
 0x367   :  { %v1134_v37 = vsel %vm3412_vm9, %v1132_v46, %v1114_v28  ;;  %v1133_v13 = vsel %vm3408_vm8, %v1132_v46, %v1113_v30  ;;  %v4555_v46 = vld [vmem:[#allocation30_spill] sm:$0xff]  ;;  %v4557_v30 = vld [vmem:[#allocation32_spill] sm:$0xff]  ;;  %v4558_v28 = vpack.c.bf16 %v3575_v26, %v3562_v33 }
 0x368   :  { %vm4054_vm5 = vcmp.eq.s32.totalorder %v4540_v25, %v1134_v37  ;;  %vm4059_vm7 = vcmp.eq.s32.totalorder %v4543_v57, %v1133_v13  ;;  %v4559_v37 = vpack.c.bf16 %v3590_v49, %v3588_v9  ;;  %v4564_v13 = vpack.c.bf16 %v3712_v56, %v3710_v31 }
 0x369   :  { %2138 = vmatprep.mubr.msk.f32.mxu0 %vm4054_vm5, %v2819_v61  ;;  %v2131_v40 = vsel %vm4054_vm5, 1.0, %v4546_v36  ;;  %v2130_v41 = vsel %vm4059_vm7, 1.0, %v4546_v36  ;;  %v4565_v25 = vpack.c.bf16 %v3723_v43, %v3714_v2  ;;  %v4566_v57 = vpack.c.bf16 %v3749_v27, %v3747_v18 }
 0x36a   :  { %2139 = vmatmul.mubr.msk.f32.vlgmr.msra.gmra.mrb[2].mxu0 %vm4059_vm7, %v2819_v61  ;;  %v1238_v22 = vsub.f32 %v2131_v40, %v2131_v40  ;;  %v4075_v63 = vsub.f32 %v2130_v41, %v2130_v41  ;;  %v4567_v36 = vpack.c.bf16 %v3753_v44, %v3751_v29  ;;  %v4568_v40 = vpack.c.bf16 %v3779_v59, %v3777_v58 }
 0x36b   :  { %v4569_v41 = vpack.c.bf16 %v3791_v53, %v3781_v32 }
 0x36c   :  { %v1239_v60 = vand.u32 4294901760, %v1238_v22  ;;  %v1245_v35 = vand.u32 4294901760, %v4075_v63 }
 0x36e   :  { %v1240_v21 = vsub.f32 %v1238_v22, %v1239_v60  ;;  %v1246_v54 = vsub.f32 %v4075_v63, %v1245_v35 }
 0x370   :  { %v1241_v0 = vand.u32 4294901760, %v1240_v21  ;;  %v1247_v55 = vand.u32 4294901760, %v1246_v54  ;;  %v4571_v21 = vpack.c.bf16 %v3823_v38, %v3821_v1  ;;  %v4572_v54 = vld [vmem:[#allocation20_spill] sm:$0xff] }
 0x372   :  { %1242 = vmatprep.mubr.f32.mxu1 %v1241_v0  ;;  %v4573_v0 = vld [vmem:[#allocation14_spill] sm:$0xff] }
 0x373   :  { %1248 = vmatmul.mubr.f32.vlgmr.msra.gmra.mrb[0].mxu1 %v1247_v55  ;;  %v4574_v55 = vpack.c.bf16 %v4572_v54, %v4573_v0 }
 0x374   :  { %2612 = vmatpush3.bf16.msra.mxu1 %v4547_v10  ;;  %2132 = vmatprep.mubr.msk.f32.mxu1 %vm4054_vm5, %v2819_v61  ;;  %v4575_v10 = vpack.c.bf16 %v3841_v5, %v3839_v45 }
 0x375   :  { %2614 = vmatprep.subr.bf16.mxu1 %v4548_v47  ;;  %v4576_v47 = vld [vmem:[#allocation18_spill] sm:$0xff] }
 0x378   :  { %2616 = vmatpush3.bf16.msra.mxu1 %v4549_v48  ;;  %v4577_v48 = vld [vmem:[#allocation2_spill] sm:$0xff] }
 0x379   :  { %2618 = vmatprep.subr.bf16.mxu1 %v4550_v14  ;;  %v4578_v14 = vld [vmem:[#allocation19_spill] sm:$0xff] }
 0x37c   :  { %2620 = vmatpush3.bf16.msra.mxu1 %v4551_v11  ;;  %v4579_v11 = vld [vmem:[#allocation3_spill] sm:$0xff] }
 0x37d   :  { %2622 = vmatprep.subr.bf16.mxu1 %v4552_v42  ;;  %v4580_v42 = vld [vmem:[#allocation4_spill] sm:$0xff] }
 0x380   :  { %2624 = vmatpush3.bf16.msra.mxu1 %v4553_v12  ;;  %v4581_v12 = vld [vmem:[#allocation5_spill] sm:$0xff] }
 0x381   :  { %2626 = vmatprep.subr.bf16.mxu1 %v4554_v4  ;;  %v4582_v4 = vld [vmem:[#allocation6_spill] sm:$0xff] }
 0x384   :  { %2628 = vmatpush3.bf16.msra.mxu1 %v4555_v46  ;;  %v4583_v46 = vld [vmem:[#allocation7_spill] sm:$0xff] }
 0x385   :  { %2630 = vmatprep.subr.bf16.mxu1 %v4556_v23  ;;  %v4584_v23 = vld [vmem:[#allocation8_spill] sm:$0xff] }
 0x388   :  { %2632 = vmatpush3.bf16.msra.mxu1 %v4557_v30  ;;  %v4585_v30 = vld [vmem:[#allocation9_spill] sm:$0xff] }
 0x389   :  { %2634 = vmatprep.subr.bf16.mxu1 %v3985_v62  ;;  %v4563_v62 = vpack.c.bf16 %v3645_v8, %v3643_v3 }
 0x38c   :  { %2636 = vmatpush3.bf16.msra.mxu1 %v3987_v20  ;;  %v4560_v20 = vpack.c.bf16 %v3616_v50, %v3602_v16 }
 0x38d   :  { %2638 = vmatprep.subr.bf16.mxu1 %v3995_v39  ;;  %v4562_v39 = vpack.c.bf16 %v3638_v34, %v3634_v19 }
 0x390   :  { %2640 = vmatpush3.bf16.msra.mxu1 %v3997_v24  ;;  %v4561_v24 = vpack.c.bf16 %v3631_v17, %v3629_v15 }
 0x391   :  { %2642 = vmatprep.subr.bf16.mxu1 %v4558_v28  ;;  %v4586_v28 = vld [vmem:[#allocation10_spill] sm:$0xff] }
 0x393   :  { %2133 = vmatmul.mubr.msk.f32.vlgmr.msra.gmra.mrb[2].mxu1 %vm4059_vm7, %v2819_v61 }
 0x394   :  { %2644 = vmatpush3.bf16.msra.mxu1 %v4559_v37  ;;  %1615 = vmatprep.mubr.f32.mxu1 %v1238_v22  ;;  %v4570_v22 = vpack.c.bf16 %v3817_v51, %v3815_v6  ;;  %v4587_v37 = vld [vmem:[#allocation11_spill] sm:$0xff] }
 0x395   :  { %2646 = vmatprep.subr.bf16.mxu1 %v4560_v20  ;;  %v4589_v20 = vld [vmem:[#allocation13_spill] sm:$0xff] }
 0x398   :  { %2648 = vmatpush3.bf16.msra.mxu1 %v4561_v24  ;;  %v4590_v24 = vld [vmem:[#allocation16_spill] sm:$0xff] }
 0x399   :  { %2650 = vmatprep.subr.bf16.mxu1 %v4562_v39  ;;  %v4591_v39 = vand.u32 4294901760, %v3562_v33  ;;  %v4598_v33 = vand.u32 4294901760, %v3629_v15  ;;  %v4605_v15 = vand.u32 4294901760, %v3712_v56  ;;  %v4612_v56 = vand.u32 4294901760, %v3777_v58 }
 0x39a   :  { %v4619_v58 = vand.u32 4294901760, %v3823_v38 }
 0x39c   :  { %2652 = vmatpush3.bf16.msra.mxu1 %v4563_v62  ;;  %v4592_v62 = vand.u32 4294901760, %v3575_v26  ;;  %v4599_v26 = vand.u32 4294901760, %v3631_v17  ;;  %v4606_v17 = vand.u32 4294901760, %v3714_v2  ;;  %v4613_v2 = vand.u32 4294901760, %v3779_v59 }
 0x39d   :  { %2654 = vmatprep.subr.bf16.mxu1 %v4564_v13  ;;  %v4620_v59 = vand.u32 4294901760, %v4573_v0 }
 0x39e   :  { %v2705_v13 = vpack.c.bf16 %v4592_v62, %v4591_v39 }
 0x3a0   :  { %2656 = vmatpush3.bf16.msra.mxu1 %v4565_v25  ;;  %v4593_v25 = vld [vmem:[#allocation21_spill] sm:$0xff] }
 0x3a1   :  { %2658 = vmatprep.subr.bf16.mxu1 %v4566_v57  ;;  %v4594_v57 = vand.u32 4294901760, %v3588_v9  ;;  %v2711_v9 = vpack.c.bf16 %v4599_v26, %v4598_v33 }
 0x3a4   :  { %2660 = vmatpush3.bf16.msra.mxu1 %v4567_v36  ;;  %v4595_v36 = vand.u32 4294901760, %v3590_v49  ;;  %v4600_v49 = vand.u32 4294901760, %v3634_v19  ;;  %v4607_v19 = vand.u32 4294901760, %v3723_v43  ;;  %v4614_v43 = vand.u32 4294901760, %v3781_v32 }
 0x3a5   :  { %2662 = vmatprep.subr.bf16.mxu1 %v4568_v40  ;;  %v4621_v32 = vand.u32 4294901760, %v4572_v54 }
 0x3a6   :  { %v2707_v40 = vpack.c.bf16 %v4595_v36, %v4594_v57  ;;  %v2719_v62 = vpack.c.bf16 %v4607_v19, %v4606_v17  ;;  %v2725_v36 = vpack.c.bf16 %v4613_v2, %v4612_v56 }
 0x3a8   :  { %2664 = vmatpush3.bf16.msra.mxu1 %v4569_v41  ;;  %v4596_v41 = vand.u32 4294901760, %v3602_v16  ;;  %v4601_v16 = vand.u32 4294901760, %v3638_v34  ;;  %v4608_v34 = vand.u32 4294901760, %v3747_v18  ;;  %v4615_v18 = vand.u32 4294901760, %v3791_v53 }
 0x3a9   :  { %2666 = vmatprep.subr.bf16.mxu1 %v4570_v22  ;;  %v4597_v22 = vand.u32 4294901760, %v3616_v50  ;;  %v4622_v53 = vand.u32 4294901760, %v3839_v45 }
 0x3aa   :  { %v2713_v50 = vpack.c.bf16 %v4601_v16, %v4600_v49  ;;  %v2816_v49 = vld [vmem:[%s4274_s0] sm:$0xff] }
 0x3ac   :  { %2668 = vmatpush3.bf16.msra.mxu1 %v4571_v21  ;;  %v2709_v21 = vpack.c.bf16 %v4597_v22, %v4596_v41 }
 0x3ad   :  { %2670 = vmatprep.subr.bf16.mxu1 %v4574_v55 }
 0x3b0   :  { %2672 = vmatpush3.bf16.msra.mxu1 %v4575_v10  ;;  %v4604_v10 = vand.u32 4294901760, %v3710_v31  ;;  %v4611_v31 = vand.u32 4294901760, %v3753_v44  ;;  %v4618_v44 = vand.u32 4294901760, %v3821_v1 }
 0x3b1   :  { %2674 = vmatprep.subr.bf16.mxu1 %v4576_v47 }
 0x3b2   :  { %v2717_v39 = vpack.c.bf16 %v4605_v15, %v4604_v10  ;;  %v2731_v22 = vpack.c.bf16 %v4619_v58, %v4618_v44 }
 0x3b3   :  { %1618 = vmatmul.mubr.f32.vlgmr.msra.gmra.mrb[4].mxu1 %v4075_v63  ;;  %v4602_v63 = vand.u32 4294901760, %v3643_v3  ;;  %v4609_v3 = vand.u32 4294901760, %v3749_v27  ;;  %v4616_v27 = vand.u32 4294901760, %v3815_v6  ;;  %v4623_v6 = vand.u32 4294901760, %v3841_v5 }
 0x3b4   :  { %2676 = vmatpush3.bf16.msra.mxu1 %v4577_v48  ;;  %1722 = vmatprep.mubr.f32.mxu1 %v1239_v60  ;;  %v4588_v60 = vld [vmem:[#allocation12_spill] sm:$0xff] }
 0x3b5   :  { %2678 = vmatprep.subr.bf16.mxu1 %v4578_v14  ;;  %v2735_v33 = vpack.c.bf16 %v4623_v6, %v4622_v53 }
 0x3b8   :  { %2680 = vmatpush3.bf16.msra.mxu1 %v4579_v11 }
 0x3b9   :  { %2682 = vmatprep.subr.bf16.mxu1 %v4580_v42 }
 0x3bc   :  { %2684 = vmatpush3.bf16.msra.mxu1 %v4581_v12 }
 0x3bd   :  { %2686 = vmatprep.subr.bf16.mxu1 %v4582_v4 }
 0x3c0   :  { %2688 = vmatpush3.bf16.msra.mxu1 %v4583_v46 }
 0x3c1   :  { %2690 = vmatprep.subr.bf16.mxu1 %v4584_v23 }
 0x3c4   :  { %2692 = vmatpush3.bf16.msra.mxu1 %v4585_v30 }
 0x3c5   :  { %2694 = vmatprep.subr.bf16.mxu1 %v4586_v28 }
 0x3c8   :  { %2696 = vmatpush3.bf16.msra.mxu1 %v4587_v37 }
 0x3c9   :  { %2698 = vmatprep.subr.bf16.mxu1 %v4588_v60 }
 0x3cc   :  { %2700 = vmatpush3.bf16.msra.mxu1 %v4589_v20 }
 0x3cd   :  { %2702 = vmatprep.subr.bf16.mxu1 %v4590_v24 }
 0x3d0   :  { %2704 = vmatpush3.bf16.msra.mxu1 %v4593_v25 }
 0x3d1   :  { %2706 = vmatprep.subr.bf16.mxu1 %v2705_v13  ;;  %v2721_v13 = vpack.c.bf16 %v4609_v3, %v4608_v34 }
 0x3d3   :  { %1726 = vmatmul.mubr.f32.vlgmr.msra.gmra.mrb[6].mxu1 %v1245_v35  ;;  %v4603_v35 = vand.u32 4294901760, %v3645_v8  ;;  %v4610_v8 = vand.u32 4294901760, %v3751_v29  ;;  %v4617_v29 = vand.u32 4294901760, %v3817_v51 }
 0x3d4   :  { %2708 = vmatpush3.bf16.msra.mxu1 %v2707_v40  ;;  %2134 = vmatprep.mubr.msk.f32.mxu1 %vm4054_vm5, %v2819_v61  ;;  %v2727_v40 = vpack.c.bf16 %v4615_v18, %v4614_v43 }
 0x3d5   :  { %2710 = vmatprep.subr.bf16.mxu1 %v2709_v21  ;;  %v2715_v55 = vpack.c.bf16 %v4603_v35, %v4602_v63  ;;  %v2723_v57 = vpack.c.bf16 %v4611_v31, %v4610_v8  ;;  %v2729_v41 = vpack.c.bf16 %v4617_v29, %v4616_v27  ;;  %v2733_v21 = vpack.c.bf16 %v4621_v32, %v4620_v59 }
 0x3d8   :  { %2712 = vmatpush3.bf16.msra.mxu1 %v2711_v9 }
 0x3d9   :  { %2714 = vmatprep.subr.bf16.mxu1 %v2713_v50 }
 0x3dc   :  { %2716 = vmatpush3.bf16.msra.mxu1 %v2715_v55 }
 0x3dd   :  { %2718 = vmatprep.subr.bf16.mxu1 %v2717_v39 }
 0x3e0   :  { %2720 = vmatpush3.bf16.msra.mxu1 %v2719_v62 }
 0x3e1   :  { %2722 = vmatprep.subr.bf16.mxu1 %v2721_v13 }
 0x3e4   :  { %2724 = vmatpush3.bf16.msra.mxu1 %v2723_v57 }
 0x3e5   :  { %2726 = vmatprep.subr.bf16.mxu1 %v2725_v36 }
 0x3e8   :  { %2728 = vmatpush3.bf16.msra.mxu1 %v2727_v40 }
 0x3e9   :  { %2730 = vmatprep.subr.bf16.mxu1 %v2729_v41 }
 0x3ec   :  { %2732 = vmatpush3.bf16.msra.mxu1 %v2731_v22 }
 0x3ed   :  { %2734 = vmatprep.subr.bf16.mxu1 %v2733_v21 }
 0x3f0   :  { %2736 = vmatpush3.bf16.msra.mxu1 %v2735_v33 }
 0x3f1   :  { %2738 = vmatprep.subr.bf16.mxu1 %v4576_v47 }
 0x3f3   :  { %2135 = vmatmul.mubr.msk.f32.vlgmr.msra.gmra.mrb[8].mxu1 %vm4059_vm7, %v2819_v61 }
 0x3f4   :  { %2740 = vmatpush3.bf16.msra.mxu1 %v4577_v48  ;;  %2136 = vmatprep.mubr.msk.f32.mxu1 %vm4054_vm5, %v2819_v61 }
 0x3f5   :  { %2742 = vmatprep.subr.bf16.mxu1 %v4578_v14 }
 0x3f8   :  { %2744 = vmatpush3.bf16.msra.mxu1 %v4579_v11 }
 0x3f9   :  { %2746 = vmatprep.subr.bf16.mxu1 %v4580_v42 }
 0x3fc   :  { %2748 = vmatpush3.bf16.msra.mxu1 %v4581_v12 }
 0x3fd   :  { %2750 = vmatprep.subr.bf16.mxu1 %v4582_v4 }
 0x400   :  { %2752 = vmatpush3.bf16.msra.mxu1 %v4583_v46 }
 0x401   :  { %2754 = vmatprep.subr.bf16.mxu1 %v4584_v23 }
 0x404   :  { %2756 = vmatpush3.bf16.msra.mxu1 %v4585_v30 }
 0x405   :  { %2758 = vmatprep.subr.bf16.mxu1 %v4586_v28 }
 0x408   :  { %2760 = vmatpush3.bf16.msra.mxu1 %v4587_v37 }
 0x409   :  { %2762 = vmatprep.subr.bf16.mxu1 %v4588_v60 }
 0x40c   :  { %2764 = vmatpush3.bf16.msra.mxu1 %v4589_v20 }
 0x40d   :  { %2766 = vmatprep.subr.bf16.mxu1 %v4590_v24 }
 0x410   :  { %2768 = vmatpush3.bf16.msra.mxu1 %v4593_v25 }
 0x413   :  { %2137 = vmatmul.mubr.msk.f32.vlgmr.msra.gmra.mrb[10].mxu1 %vm4059_vm7, %v2819_v61 }
 0x43d   :  { %v2382_v38 = vpop.f32.mrb[2].mxu0 }
 0x43e   :  { %v2383_v1 = vpop.f32.mrb[3].mxu0 }
 0x43f   :  { %v2384_v51 = vadd.f32 %v2383_v1, %v2382_v38 }
 0x441   :  { %v2811_v45 = vtrunc.f32 %v2384_v51 }
 0x443   :  { %v2812_v5 = vcvt.f32.s32 %v2811_v45 }
 0x445   :  { %2108 = vst.msk [vmem:[%s4280_s8] sm:$0xff] %vm2107_vm4, %v2812_v5 }
 0x446   :  { %v2172_v52 = vpop.f32.mrb[0].mxu1 }
 0x447   :  { %v2173_v54 = vpop.f32.mrb[1].mxu1 }
 0x448   :  { %v2174_v0 = vadd.f32 %v2173_v54, %v2172_v52 }
 0x466   :  { %v2207_v47 = vpop.f32.mrb[2].mxu1 }
 0x467   :  { %v2208_v48 = vpop.f32.mrb[3].mxu1 }
 0x468   :  { %v2209_v14 = vadd.f32 %v2208_v48, %v2207_v47 }
 0x46a   :  { %v1482_v11 = vadd.f32 %v2209_v14, %v2174_v0 }
 0x486   :  { %v2242_v42 = vpop.f32.mrb[4].mxu1 }
 0x487   :  { %v2243_v7 = vpop.f32.mrb[5].mxu1 }
 0x488   :  { %v2244_v61 = vadd.f32 %v2243_v7, %v2242_v42 }
 0x48a   :  { %v1620_v12 = vadd.f32 %v2244_v61, %v1482_v11 }
 0x4a6   :  { %v2277_v4 = vpop.f32.mrb[6].mxu1 }
 0x4a7   :  { %v2278_v46 = vpop.f32.mrb[7].mxu1 }
 0x4a8   :  { %v2279_v23 = vadd.f32 %v2278_v46, %v2277_v4 }
 0x4aa   :  { %v1728_v30 = vadd.f32 %v2279_v23, %v1620_v12 }
 0x4c6   :  { %v2312_v28 = vpop.f32.mrb[8].mxu1 }
 0x4c7   :  { %v2313_v37 = vpop.f32.mrb[9].mxu1 }
 0x4c8   :  { %v2314_v60 = vadd.f32 %v2313_v37, %v2312_v28 }
 0x4ca   :  { %v1896_v20 = vadd.f32 %v2314_v60, %v1728_v30 }
 0x4e6   :  { %v2347_v24 = vpop.f32.mrb[10].mxu1 }
 0x4e7   :  { %v2348_v25 = vpop.f32.mrb[11].mxu1 }
 0x4e8   :  { %v2349_v26 = vadd.f32 %v2348_v25, %v2347_v24 }
 0x4ea   :  { %v2000_v9 = vadd.f32 %v2349_v26, %v1896_v20 }
 0x4ec   :  { %2105 = vst [vmem:[%s4281_s7] sm:$0xff] %v2000_v9  ;;  %v2109_v16 = vsub.f32 %v2000_v9, %v2816_v49 }
 0x4ee   :  { %v2110_v50 = vmul.f32 %v2109_v16, %v2109_v16 }
 0x4f0   :  { %v2111_v63 = vrot.slane %v2110_v50, 4 }
 0x4f2   :  { %v2112_v35 = vadd.f32 %v2111_v63, %v2110_v50 }
 0x4f4   :  { %v2113_v55 = vrot.slane %v2112_v35, 2 }
 0x4f6   :  { %v2114_v10 = vadd.f32 %v2113_v55, %v2112_v35 }
 0x4f8   :  { %v2115_v15 = vrot.slane %v2114_v10, 1 }
 0x4fa   :  { %v2116_v39 = vadd.f32 %v2115_v15, %v2114_v10 }
 0x4fc   :  { %2117 = vst [vmem:[%s4282_s9] sm:$0x1] %v2116_v39 }

</bundles_post_ra>
